<compile_context>
chip_gen: v7x
topology: tpu7x:2x2x1
jax: 0.10.0
libtpu: 0.0.40
codegen_flags: <defaults>
</compile_context>

<pallas_src>
import functools
import math

import jax
import jax.numpy as jnp
from jax.experimental import pallas as pl
from jax.experimental.pallas import tpu as pltpu


# ----------------------------------------------------------------------------
# Tiling helpers
# ----------------------------------------------------------------------------
_VMEM_LIMIT = 48 * 1024 * 1024   # within scoped-VMEM budget of v5e/v6e/v7x


def _round_up(x, m):
    return ((x + m - 1) // m) * m


def _pick_tile(dim, target, gran):
    """Pad `dim` and pick a tile (multiple of `gran`, ~<= target) dividing it."""
    padded = _round_up(dim, gran)
    if padded <= max(target, 128):
        return padded, padded                       # single full-extent block
    best_p, best_t, best_w = None, None, None
    for t in range(128, max(target, 128) + 1, 128):
        p = _round_up(dim, t)
        w = p - dim
        if best_w is None or w < best_w or (w == best_w and t > best_t):
            best_p, best_t, best_w = p, t, w
    return best_p, best_t


def _cparams(sems):
    return pltpu.CompilerParams(dimension_semantics=sems,
                                vmem_limit_bytes=_VMEM_LIMIT)


# ----------------------------------------------------------------------------
# Tiled matmul (+bias, optional ReLU): bf16 operands, f32 accumulation
# ----------------------------------------------------------------------------
def _matmul_bias_kernel(x_ref, w_ref, b_ref, o_ref, acc_ref, *, activation):
    @pl.when(pl.program_id(2) == 0)
    def _init():
        acc_ref[...] = jnp.zeros_like(acc_ref)

    acc_ref[...] += jnp.dot(x_ref[...], w_ref[...],
                            preferred_element_type=jnp.float32)

    @pl.when(pl.program_id(2) == pl.num_programs(2) - 1)
    def _finalize():
        acc = acc_ref[...] + b_ref[...]
        if activation == "relu":
            acc = jnp.maximum(acc, 0.0)
        o_ref[...] = acc.astype(o_ref.dtype)


def matmul_bias(x, w, b, activation="none", out_dtype=jnp.float32,
                tm=256, tn=256, tk=512):
    """(M, K) @ (K, N) + b, tiled over (M, N, K) with a VMEM accumulator."""
    M, K = x.shape
    N = w.shape[1]
    Mp, tmm = _pick_tile(M, tm, 8)
    Np, tnn = _pick_tile(N, tn, 128)
    if K <= tk:                                   # full-K block, no K padding
        Kp, tkk = K, K
    else:
        Kp, tkk = _pick_tile(K, tk, 128)
    xp = jnp.pad(x, ((0, Mp - M), (0, Kp - K))).astype(jnp.bfloat16)
    wp = jnp.pad(w, ((0, Kp - K), (0, Np - N))).astype(jnp.bfloat16)
    bp = jnp.pad(b.astype(jnp.float32).reshape(1, N), ((0, 0), (0, Np - N)))
    out = pl.pallas_call(
        functools.partial(_matmul_bias_kernel, activation=activation),
        out_shape=jax.ShapeDtypeStruct((Mp, Np), out_dtype),
        grid=(Mp // tmm, Np // tnn, Kp // tkk),
        in_specs=[pl.BlockSpec((tmm, tkk), lambda i, j, k: (i, k)),
                  pl.BlockSpec((tkk, tnn), lambda i, j, k: (k, j)),
                  pl.BlockSpec((1, tnn), lambda i, j, k: (0, j))],
        out_specs=pl.BlockSpec((tmm, tnn), lambda i, j, k: (i, j)),
        scratch_shapes=[pltpu.VMEM((tmm, tnn), jnp.float32)],
        compiler_params=_cparams(("parallel", "parallel", "arbitrary")),
    )(xp, wp, bp)
    return out[:M, :N]


# ----------------------------------------------------------------------------
# LayerNorm (tiled over rows) and fused LayerNorm + matmul (+ optional row mask)
# ----------------------------------------------------------------------------
def _layernorm_kernel(x_ref, g_ref, b_ref, o_ref, *, eps):
    x = x_ref[...].astype(jnp.float32)
    mu = jnp.mean(x, axis=-1, keepdims=True)
    var = jnp.mean(jnp.square(x - mu), axis=-1, keepdims=True)
    o_ref[...] = ((x - mu) * jax.lax.rsqrt(var + eps)
                  * g_ref[...] + b_ref[...]).astype(o_ref.dtype)


def layer_norm(x2d, gamma, beta, eps=1e-12, out_dtype=jnp.float32, tm=512):
    M, D = x2d.shape
    Mp, tmm = _pick_tile(M, tm, 8)
    xp = jnp.pad(x2d, ((0, Mp - M), (0, 0)))
    out = pl.pallas_call(
        functools.partial(_layernorm_kernel, eps=eps),
        out_shape=jax.ShapeDtypeStruct((Mp, D), out_dtype),
        grid=(Mp // tmm,),
        in_specs=[pl.BlockSpec((tmm, D), lambda i: (i, 0)),
                  pl.BlockSpec((1, D), lambda i: (0, 0)),
                  pl.BlockSpec((1, D), lambda i: (0, 0))],
        out_specs=pl.BlockSpec((tmm, D), lambda i: (i, 0)),
        compiler_params=_cparams(("parallel",)),
    )(xp, gamma.reshape(1, D), beta.reshape(1, D))
    return out[:M]


def _ln_matmul_kernel(*refs, eps, has_mask):
    o_ref = refs[-1]
    x_ref, g_ref, b_ref, w_ref, wb_ref = refs[:5]
    m_ref = refs[5] if has_mask else None
    x = x_ref[...].astype(jnp.float32)
    mu = jnp.mean(x, axis=-1, keepdims=True)
    var = jnp.mean(jnp.square(x - mu), axis=-1, keepdims=True)
    xn = (x - mu) * jax.lax.rsqrt(var + eps) * g_ref[...] + b_ref[...]
    acc = jnp.dot(xn.astype(jnp.bfloat16), w_ref[...],
                  preferred_element_type=jnp.float32)
    acc = acc + wb_ref[...]
    if has_mask:
        acc = acc * m_ref[...]
    o_ref[...] = acc.astype(o_ref.dtype)


def layernorm_matmul_bias(x2d, gamma, beta, w, b, eps=1e-12, mask_rows=None,
                          out_dtype=jnp.float32, tm=256, tn=256):
    """LayerNorm(x) @ w + b (full-K contraction, tiled M/N), optional row mask."""
    M, D = x2d.shape
    N = w.shape[1]
    Mp, tmm = _pick_tile(M, tm, 8)
    Np, tnn = _pick_tile(N, tn, 128)
    xp = jnp.pad(x2d, ((0, Mp - M), (0, 0)))
    wp = jnp.pad(w, ((0, 0), (0, Np - N))).astype(jnp.bfloat16)
    bp = jnp.pad(b.astype(jnp.float32).reshape(1, N), ((0, 0), (0, Np - N)))
    has_mask = mask_rows is not None
    args = [xp, gamma.reshape(1, D), beta.reshape(1, D), wp, bp]
    in_specs = [pl.BlockSpec((tmm, D), lambda i, j: (i, 0)),
                pl.BlockSpec((1, D), lambda i, j: (0, 0)),
                pl.BlockSpec((1, D), lambda i, j: (0, 0)),
                pl.BlockSpec((D, tnn), lambda i, j: (0, j)),
                pl.BlockSpec((1, tnn), lambda i, j: (0, j))]
    if has_mask:
        mp = jnp.pad(mask_rows.astype(jnp.float32).reshape(M, 1),
                     ((0, Mp - M), (0, 0)))
        args.append(mp)
        in_specs.append(pl.BlockSpec((tmm, 1), lambda i, j: (i, 0)))
    out = pl.pallas_call(
        functools.partial(_ln_matmul_kernel, eps=eps, has_mask=has_mask),
        out_shape=jax.ShapeDtypeStruct((Mp, Np), out_dtype),
        grid=(Mp // tmm, Np // tnn),
        in_specs=in_specs,
        out_specs=pl.BlockSpec((tmm, tnn), lambda i, j: (i, j)),
        compiler_params=_cparams(("parallel", "parallel")),
    )(*args)
    return out[:M, :N]


# ----------------------------------------------------------------------------
# Conv1d(kernel=3, padding=1) as in-kernel 3-tap halo accumulation
# (fused bias / ReLU / pad-mask / scale / residual add)
# ----------------------------------------------------------------------------
def _conv3_kernel(*refs, t_len, activation, scale, has_mask, has_res):
    o_ref = refs[-1]
    xp_ref, w0_ref, w1_ref, w2_ref, b_ref = refs[:5]
    nxt = 5
    m_ref = None
    r_ref = None
    if has_mask:
        m_ref = refs[nxt]
        nxt += 1
    if has_res:
        r_ref = refs[nxt]
        nxt += 1
    acc = jnp.dot(xp_ref[0:t_len, :], w0_ref[...],
                  preferred_element_type=jnp.float32)
    acc = acc + jnp.dot(xp_ref[1:t_len + 1, :], w1_ref[...],
                        preferred_element_type=jnp.float32)
    acc = acc + jnp.dot(xp_ref[2:t_len + 2, :], w2_ref[...],
                        preferred_element_type=jnp.float32)
    acc = acc + b_ref[...]
    if activation == "relu":
        acc = jnp.maximum(acc, 0.0)
    if has_mask:
        acc = acc * m_ref[...]
    if scale != 1.0:
        acc = acc * jnp.float32(scale)
    if has_res:
        acc = acc + r_ref[...]
    o_ref[...] = acc.astype(o_ref.dtype)


def conv1d_k3(x_btc, w_mat, b, activation="none", mask_bt=None,
              residual_btc=None, scale=1.0, out_dtype=jnp.float32, tn=256):
    """Conv1d(k=3, pad=1), channels-last; fused bias/act/mask/scale/residual.

    `w_mat` is the (3*Cin, Cout) tap-major flattened torch weight.  The padded
    input is read once per batch (bf16 in HBM); no 3x unfold is materialized.
    """
    B, T, Cin = x_btc.shape
    N = w_mat.shape[1]
    Np, tnn = _pick_tile(N, tn, 128)
    xp = jnp.pad(x_btc, ((0, 0), (1, 1), (0, 0))).astype(jnp.bfloat16)
    w_taps = [jnp.pad(w_mat[k * Cin:(k + 1) * Cin], ((0, 0), (0, Np - N)))
              .astype(jnp.bfloat16) for k in range(3)]
    bp = jnp.pad(b.astype(jnp.float32).reshape(1, N), ((0, 0), (0, Np - N)))
    has_mask = mask_bt is not None
    has_res = residual_btc is not None

    args = [xp] + w_taps + [bp]
    in_specs = ([pl.BlockSpec((None, T + 2, Cin), lambda bb, nn: (bb, 0, 0))]
                + [pl.BlockSpec((Cin, tnn), lambda bb, nn: (0, nn))] * 3
                + [pl.BlockSpec((1, tnn), lambda bb, nn: (0, nn))])
    if has_mask:
        args.append(mask_bt.astype(jnp.float32).reshape(B, T, 1))
        in_specs.append(pl.BlockSpec((None, T, 1), lambda bb, nn: (bb, 0, 0)))
    if has_res:
        resp = jnp.pad(residual_btc.astype(jnp.float32),
                       ((0, 0), (0, 0), (0, Np - N)))
        args.append(resp)
        in_specs.append(pl.BlockSpec((None, T, tnn), lambda bb, nn: (bb, 0, nn)))

    out = pl.pallas_call(
        functools.partial(_conv3_kernel, t_len=T, activation=activation,
                          scale=float(scale), has_mask=has_mask,
                          has_res=has_res),
        out_shape=jax.ShapeDtypeStruct((B, T, Np), out_dtype),
        grid=(B, Np // tnn),
        in_specs=in_specs,
        out_specs=pl.BlockSpec((None, T, tnn), lambda bb, nn: (bb, 0, nn)),
        compiler_params=_cparams(("parallel", "parallel")),
    )(*args)
    return out[:, :, :N]
    # TODO(synk): for very long T, additionally tile the T axis with a 2-row halo.


# ----------------------------------------------------------------------------
# Relative-position attention (head-folded, grid over batch)
# ----------------------------------------------------------------------------
def _relpos_kernel(qkv_ref, vb_ref, p_ref, o_ref, *, H, dk):
    qkv = qkv_ref[...]                              # (T, 3D) bf16
    p = p_ref[...]                                  # (P, D)  bf16
    vb = vb_ref[...]                                # (1, D)  f32
    for h in range(H):
        sl = slice(h * dk, (h + 1) * dk)
        q_v = (qkv[:, sl].astype(jnp.float32) + vb[:, sl]).astype(jnp.bfloat16)
        o_ref[h] = jax.lax.dot_general(
            q_v, p[:, sl], (((1,), (1,)), ((), ())),
            preferred_element_type=jnp.float32)     # (T, P) = q_v @ p_h^T


def rel_pos_scores(qkv3, pos_bias_v, p_bf16, H, dk):
    """(q + pos_bias_v) @ p^T per head  ->  (B, H, T, 2T-1) f32."""
    B, T, D3 = qkv3.shape
    D = H * dk
    P = p_bf16.shape[0]
    return pl.pallas_call(
        functools.partial(_relpos_kernel, H=H, dk=dk),
        out_shape=jax.ShapeDtypeStruct((B, H, T, P), jnp.float32),
        grid=(B,),
        in_specs=[pl.BlockSpec((None, T, D3), lambda b: (b, 0, 0)),
                  pl.BlockSpec((1, D), lambda b: (0, 0)),
                  pl.BlockSpec((P, D), lambda b: (0, 0))],
        out_specs=pl.BlockSpec((None, H, T, P), lambda b: (b, 0, 0, 0)),
        compiler_params=_cparams(("parallel",)),
    )(qkv3, pos_bias_v.reshape(1, D), p_bf16)


def _attn_kernel(qkv_ref, ub_ref, bd_ref, m_ref, wo_ref, bo_ref, res_ref,
                 o_ref, *, H, dk, scale):
    D = H * dk
    qkv = qkv_ref[...]                              # (T, 3D) bf16
    ub = ub_ref[...]                                # (1, D)  f32
    m = m_ref[...]                                  # (1, T)  f32 key mask
    neg = jnp.float32(jnp.finfo(jnp.float32).min)
    ctx = []
    for h in range(H):
        sl = slice(h * dk, (h + 1) * dk)
        q_u = (qkv[:, sl].astype(jnp.float32) + ub[:, sl]).astype(jnp.bfloat16)
        k = qkv[:, D + h * dk:D + (h + 1) * dk]
        v = qkv[:, 2 * D + h * dk:2 * D + (h + 1) * dk]
        ac = jax.lax.dot_general(q_u, k, (((1,), (1,)), ((), ())),
                                 preferred_element_type=jnp.float32)   # (T, T)
        s = (ac + bd_ref[h]) * scale
        s = jnp.where(m == 0.0, neg, s)
        s = s - jnp.max(s, axis=-1, keepdims=True)
        e = jnp.exp(s)
        attn = e * pl.reciprocal(jnp.sum(e, axis=-1, keepdims=True), approx=True)
        attn = jnp.where(m == 0.0, 0.0, attn)       # zero masked attn (espnet)
        ctx.append(jnp.dot(attn.astype(jnp.bfloat16), v,
                           preferred_element_type=jnp.float32))
    # fused output projection + bias + residual add (context never hits HBM)
    ctx_all = jnp.concatenate(ctx, axis=-1).astype(jnp.bfloat16)        # (T, D)
    out = jnp.dot(ctx_all, wo_ref[...], preferred_element_type=jnp.float32)
    o_ref[...] = (out + bo_ref[...] + res_ref[...]).astype(o_ref.dtype)


def rel_attention_block(qkv3, pos_bias_u, bd, mask_b1t, h_res, wo, bo,
                        H, dk, scale):
    """Masked rel-pos self-attn + output projection + residual; (B,T,D) f32."""
    B, T, D3 = qkv3.shape
    D = H * dk
    return pl.pallas_call(
        functools.partial(_attn_kernel, H=H, dk=dk, scale=scale),
        out_shape=jax.ShapeDtypeStruct((B, T, D), jnp.float32),
        grid=(B,),
        in_specs=[pl.BlockSpec((None, T, D3), lambda b: (b, 0, 0)),
                  pl.BlockSpec((1, D), lambda b: (0, 0)),
                  pl.BlockSpec((None, H, T, T), lambda b: (b, 0, 0, 0)),
                  pl.BlockSpec((None, 1, T), lambda b: (b, 0, 0)),
                  pl.BlockSpec((D, D), lambda b: (0, 0)),
                  pl.BlockSpec((1, D), lambda b: (0, 0)),
                  pl.BlockSpec((None, T, D), lambda b: (b, 0, 0))],
        out_specs=pl.BlockSpec((None, T, D), lambda b: (b, 0, 0)),
        compiler_params=_cparams(("parallel",)),
    )(qkv3, pos_bias_u.reshape(1, D), bd, mask_b1t,
      wo.astype(jnp.bfloat16), bo.astype(jnp.float32).reshape(1, D),
      h_res.astype(jnp.float32))
    # TODO(synk): for long T, tile the key axis with an online-softmax accumulator.


# ----------------------------------------------------------------------------
# Glue helpers (plain JAX: padding, layout, positional table)
# ----------------------------------------------------------------------------
def rel_shift(x):
    """Transformer-XL shift (pad+reshape): out[..., i, j] = x[..., i, T-1-i+j]."""
    B, H, T, P = x.shape                            # P == 2*T - 1
    x = jnp.pad(x, ((0, 0), (0, 0), (0, 0), (1, 0)))
    x = x.reshape(B, H, P + 1, T)[:, :, 1:, :]
    return x.reshape(B, H, T, P)[:, :, :, :T]
    # TODO(synk): fuse the rel_shift (pltpu.roll with stride) + bd matmul into the
    # attention kernel to drop the (B,H,T,2T-1) HBM round trip entirely.


def rel_positional_encoding(T, D):
    """espnet RelPositionalEncoding table: (2T-1, D), rel = T-1 ... -(T-1)."""
    pos = jnp.arange(T, dtype=jnp.float32)[:, None]
    div = jnp.exp(jnp.arange(0, D, 2, dtype=jnp.float32) * -(math.log(10000.0) / D))
    pe_pos = jnp.zeros((T, D), jnp.float32)
    pe_pos = pe_pos.at[:, 0::2].set(jnp.sin(pos * div))
    pe_pos = pe_pos.at[:, 1::2].set(jnp.cos(pos * div))
    pe_neg = jnp.zeros((T, D), jnp.float32)
    pe_neg = pe_neg.at[:, 0::2].set(jnp.sin(-pos * div))
    pe_neg = pe_neg.at[:, 1::2].set(jnp.cos(-pos * div))
    return jnp.concatenate([jnp.flip(pe_pos, axis=0), pe_neg[1:]], axis=0)


def make_non_pad_mask(lengths, T):
    return (jnp.arange(T)[None, :] < lengths[:, None]).astype(jnp.float32)


# ----------------------------------------------------------------------------
# Parameters (deterministic synthetic init; shapes follow the torch __init__)
# ----------------------------------------------------------------------------
def init_params(key, in_dim, D, H, linear_units, n_blocks, out_channels):
    dk = D // H
    keys = jax.random.split(key, 4 + n_blocks)
    s = 0.1

    def nrm(k, shape):
        return s * jax.random.normal(k, shape, dtype=jnp.float32)

    k0, k1, k2, k3 = keys[:4]
    # prenet Conv1d(in_dim, D, 3): torch weight (D, in_dim, 3) -> tap-major (3*Cin, D)
    prenet_w = jnp.transpose(nrm(k0, (D, in_dim, 3)), (2, 1, 0)).reshape(3 * in_dim, D)
    prenet_b = nrm(k1, (D,))

    blocks = []
    for i in range(n_blocks):
        ks = jax.random.split(keys[4 + i], 16)
        blk = dict(
            norm_mha_g=jnp.ones((D,), jnp.float32),
            norm_mha_b=jnp.zeros((D,), jnp.float32),
            wq=nrm(ks[0], (D, D)), bq=nrm(ks[1], (D,)),
            wk=nrm(ks[2], (D, D)), bk=nrm(ks[3], (D,)),
            wv=nrm(ks[4], (D, D)), bv=nrm(ks[5], (D,)),
            wo=nrm(ks[6], (D, D)), bo=nrm(ks[7], (D,)),
            wpos=nrm(ks[8], (D, D)),                   # linear_pos has no bias
            pos_bias_u=nrm(ks[9], (H, dk)),
            pos_bias_v=nrm(ks[10], (H, dk)),
            norm_ff_g=jnp.ones((D,), jnp.float32),
            norm_ff_b=jnp.zeros((D,), jnp.float32),
        )
        blk["w1"] = jnp.transpose(nrm(ks[11], (linear_units, D, 3)),
                                  (2, 1, 0)).reshape(3 * D, linear_units)
        blk["b1"] = nrm(ks[12], (linear_units,))
        blk["w2"] = jnp.transpose(nrm(ks[13], (D, linear_units, 3)),
                                  (2, 1, 0)).reshape(3 * linear_units, D)
        blk["b2"] = nrm(ks[14], (D,))
        blocks.append(blk)

    proj_w = jnp.transpose(nrm(k2, (out_channels, D, 1)), (2, 1, 0)).reshape(D, out_channels)
    proj_b = nrm(k3, (out_channels,))

    return dict(prenet_w=prenet_w, prenet_b=prenet_b, blocks=blocks,
                after_norm_g=jnp.ones((D,), jnp.float32),
                after_norm_b=jnp.zeros((D,), jnp.float32),
                proj_w=proj_w, proj_b=proj_b)


# ----------------------------------------------------------------------------
# PriorDecoder forward (eval mode: dropout = identity; g=None path)
# ----------------------------------------------------------------------------
def prior_decoder_forward(params, x, x_lengths):
    """x: (B, attention_dim + 2, T) NCT;  returns (bn (B, out_ch, T), mask (B,1,T))."""
    B, _, T = x.shape
    D = params["after_norm_g"].shape[0]
    H = params["blocks"][0]["pos_bias_u"].shape[0]
    dk = D // H

    x_mask = make_non_pad_mask(x_lengths, T)            # (B, T)
    mask_b1t = x_mask[:, None, :]                       # (B, 1, T)

    x_cl = jnp.transpose(x, (0, 2, 1))                  # (B, T, Cin)

    # prenet conv (k=3, pad=1) with fused bias + pad-mask + sqrt(D) pos-enc scale
    # (reference multiplies the binary mask twice; once is equivalent).
    h = conv1d_k3(x_cl, params["prenet_w"], params["prenet_b"],
                  mask_bt=x_mask, scale=math.sqrt(D))   # (B, T, D) f32

    pos_emb = rel_positional_encoding(T, D)             # (2T-1, D)
    scale = 1.0 / math.sqrt(dk)
    zeros_d = jnp.zeros((D,), jnp.float32)

    for blk in params["blocks"]:
        # ---- fused LayerNorm + Q/K/V projection (single-N-tile matmul) -------
        wqkv = jnp.concatenate([blk["wq"], blk["wk"], blk["wv"]], axis=1)   # (D, 3D)
        bqkv = jnp.concatenate([blk["bq"], blk["bk"], blk["bv"]])
        qkv = layernorm_matmul_bias(h.reshape(B * T, D), blk["norm_mha_g"],
                                    blk["norm_mha_b"], wqkv, bqkv,
                                    out_dtype=jnp.bfloat16, tn=1024)
        qkv3 = qkv.reshape(B, T, 3 * D)

        # ---- relative-position term: (q + v_bias) @ p^T, then rel_shift -----
        p = matmul_bias(pos_emb, blk["wpos"], zeros_d, out_dtype=jnp.bfloat16)
        bd_full = rel_pos_scores(qkv3, blk["pos_bias_v"].reshape(D), p, H, dk)
        bd = rel_shift(bd_full)                          # (B, H, T, T) f32

        # ---- masked rel-pos self-attention + out-proj + residual (fused) ----
        h = rel_attention_block(qkv3, blk["pos_bias_u"].reshape(D), bd,
                                mask_b1t, h, blk["wo"], blk["bo"],
                                H, dk, scale)            # (B, T, D) f32

        # ---- positionwise feed-forward: MultiLayeredConv1d (k=3, ReLU) ------
        xn = layer_norm(h.reshape(B * T, D), blk["norm_ff_g"], blk["norm_ff_b"],
                        out_dtype=jnp.bfloat16)
        f = conv1d_k3(xn.reshape(B, T, D), blk["w1"], blk["b1"],
                      activation="relu", out_dtype=jnp.bfloat16)
        h = conv1d_k3(f, blk["w2"], blk["b2"], residual_btc=h)   # fused residual

    # ---- fused after_norm + 1x1 proj conv + pad mask, back to NCT ----------
    bn2d = layernorm_matmul_bias(h.reshape(B * T, D), params["after_norm_g"],
                                 params["after_norm_b"], params["proj_w"],
                                 params["proj_b"],
                                 mask_rows=x_mask.reshape(B * T, 1), tn=1024)
    bn = jnp.transpose(bn2d.reshape(B, T, -1), (0, 2, 1))        # (B, out_ch, T)
    # TODO(synk): global-conditioning branch (global_channels > 0, g != None) is
    # not exercised by the default module config (global_channels = 0).
    return bn, mask_b1t


if __name__ == "__main__":
    B, T = 2, 16
    attention_dim, heads, linear_units, n_blocks, out_channels = 32, 2, 64, 2, 64

    key = jax.random.PRNGKey(0)
    kx, kp = jax.random.split(key)
    x = jax.random.normal(kx, (B, attention_dim + 2, T), dtype=jnp.float32)
    x_lengths = jnp.array([16, 11], dtype=jnp.int32)

    params = init_params(kp, attention_dim + 2, attention_dim, heads,
                         linear_units, n_blocks, out_channels)

    fwd = jax.jit(prior_decoder_forward)
    bn, x_mask = fwd(params, x, x_lengths)
    jax.block_until_ready((bn, x_mask))

    assert bn.shape == (B, out_channels, T)
    assert x_mask.shape == (B, 1, T)
    assert bool(jnp.all(jnp.isfinite(bn)))
    print("KERNEL_OK")
</pallas_src>

<mosaic_0001>
module attributes {stable_mosaic.version = 11 : i64} {
  func.func @_conv3_kernel(%arg0: i32, %arg1: i32, %arg2: memref<1x18x34xbf16, #tpu.memory_space<vmem>>, %arg3: memref<34x128xbf16, #tpu.memory_space<vmem>>, %arg4: memref<34x128xbf16, #tpu.memory_space<vmem>>, %arg5: memref<34x128xbf16, #tpu.memory_space<vmem>>, %arg6: memref<1x128xf32, #tpu.memory_space<vmem>>, %arg7: memref<1x16x1xf32, #tpu.memory_space<vmem>>, %arg8: memref<1x16x128xf32, #tpu.memory_space<vmem>>) attributes {dimension_semantics = [#tpu.dimension_semantics<parallel>, #tpu.dimension_semantics<parallel>], iteration_bounds = array<i64: 2, 1>, scalar_prefetch = 0 : i64, scratch_operands = 0 : i64, tpu.core_type = #tpu.core_type<tc>, window_params = [{transform_indices = @transform_0, window_bounds = array<i64: 1, 18, 34>}, {transform_indices = @transform_1, window_bounds = array<i64: 34, 128>}, {transform_indices = @transform_2, window_bounds = array<i64: 34, 128>}, {transform_indices = @transform_3, window_bounds = array<i64: 34, 128>}, {transform_indices = @transform_4, window_bounds = array<i64: 1, 128>}, {transform_indices = @transform_5, window_bounds = array<i64: 1, 16, 1>}, {transform_indices = @transform_6, window_bounds = array<i64: 1, 16, 128>}]} {
    %c0 = arith.constant 0 : index
    %c0_0 = arith.constant 0 : index
    %c0_1 = arith.constant 0 : index
    %0 = vector.load %arg2[%c0, %c0_0, %c0_1] : memref<1x18x34xbf16, #tpu.memory_space<vmem>>, vector<1x16x34xbf16>
    %1 = vector.shape_cast %0 : vector<1x16x34xbf16> to vector<16x34xbf16>
    %c0_2 = arith.constant 0 : index
    %c0_3 = arith.constant 0 : index
    %2 = vector.load %arg3[%c0_2, %c0_3] : memref<34x128xbf16, #tpu.memory_space<vmem>>, vector<34x128xbf16>
    %cst = arith.constant dense<0.000000e+00> : vector<16x128xf32>
    %3 = tpu.matmul %1, %2, %cst {dimension_numbers = #tpu.dot_dimension_numbers<[1], [0], [0], [1], [0, 0, 1, 1], [], []>} : vector<16x34xbf16>, vector<34x128xbf16>, vector<16x128xf32> -> vector<16x128xf32>
    %c0_4 = arith.constant 0 : index
    %c1 = arith.constant 1 : index
    %c0_5 = arith.constant 0 : index
    %4 = vector.load %arg2[%c0_4, %c1, %c0_5] : memref<1x18x34xbf16, #tpu.memory_space<vmem>>, vector<1x16x34xbf16>
    %5 = vector.shape_cast %4 : vector<1x16x34xbf16> to vector<16x34xbf16>
    %c0_6 = arith.constant 0 : index
    %c0_7 = arith.constant 0 : index
    %6 = vector.load %arg4[%c0_6, %c0_7] : memref<34x128xbf16, #tpu.memory_space<vmem>>, vector<34x128xbf16>
    %cst_8 = arith.constant dense<0.000000e+00> : vector<16x128xf32>
    %7 = tpu.matmul %5, %6, %cst_8 {dimension_numbers = #tpu.dot_dimension_numbers<[1], [0], [0], [1], [0, 0, 1, 1], [], []>} : vector<16x34xbf16>, vector<34x128xbf16>, vector<16x128xf32> -> vector<16x128xf32>
    %8 = arith.addf %3, %7 : vector<16x128xf32>
    %c0_9 = arith.constant 0 : index
    %c2 = arith.constant 2 : index
    %c0_10 = arith.constant 0 : index
    %9 = vector.load %arg2[%c0_9, %c2, %c0_10] : memref<1x18x34xbf16, #tpu.memory_space<vmem>>, vector<1x16x34xbf16>
    %10 = vector.shape_cast %9 : vector<1x16x34xbf16> to vector<16x34xbf16>
    %c0_11 = arith.constant 0 : index
    %c0_12 = arith.constant 0 : index
    %11 = vector.load %arg5[%c0_11, %c0_12] : memref<34x128xbf16, #tpu.memory_space<vmem>>, vector<34x128xbf16>
    %cst_13 = arith.constant dense<0.000000e+00> : vector<16x128xf32>
    %12 = tpu.matmul %10, %11, %cst_13 {dimension_numbers = #tpu.dot_dimension_numbers<[1], [0], [0], [1], [0, 0, 1, 1], [], []>} : vector<16x34xbf16>, vector<34x128xbf16>, vector<16x128xf32> -> vector<16x128xf32>
    %13 = arith.addf %8, %12 : vector<16x128xf32>
    %c0_14 = arith.constant 0 : index
    %c0_15 = arith.constant 0 : index
    %14 = vector.load %arg6[%c0_14, %c0_15] : memref<1x128xf32, #tpu.memory_space<vmem>>, vector<1x128xf32>
    %15 = vector.broadcast %14 : vector<1x128xf32> to vector<16x128xf32>
    %16 = arith.addf %13, %15 : vector<16x128xf32>
    %c0_16 = arith.constant 0 : index
    %c0_17 = arith.constant 0 : index
    %c0_18 = arith.constant 0 : index
    %17 = vector.load %arg7[%c0_16, %c0_17, %c0_18] : memref<1x16x1xf32, #tpu.memory_space<vmem>>, vector<1x16x1xf32>
    %18 = vector.shape_cast %17 : vector<1x16x1xf32> to vector<16x1xf32>
    %19 = vector.broadcast %18 : vector<16x1xf32> to vector<16x128xf32>
    %20 = arith.mulf %16, %19 : vector<16x128xf32>
    %cst_19 = arith.constant 5.65685415 : f32
    %21 = vector.broadcast %cst_19 : f32 to vector<16x128xf32>
    %22 = arith.mulf %20, %21 : vector<16x128xf32>
    %c0_20 = arith.constant 0 : index
    %c0_21 = arith.constant 0 : index
    %c0_22 = arith.constant 0 : index
    %23 = vector.load %arg8[%c0_20, %c0_21, %c0_22] : memref<1x16x128xf32, #tpu.memory_space<vmem>>, vector<1x16x128xf32>
    %24 = vector.shape_cast %23 : vector<1x16x128xf32> to vector<16x128xf32>
    %25 = vector.shape_cast %22 : vector<16x128xf32> to vector<1x16x128xf32>
    tpu.vector_store %arg8[%c0_20, %c0_21, %c0_22], %25 {strides = array<i32>} : memref<1x16x128xf32, #tpu.memory_space<vmem>>, vector<1x16x128xf32>,
    return
  }
  func.func @transform_0(%arg0: i32, %arg1: i32) -> (i32, i32, i32) {
    %c0_i32 = arith.constant 0 : i32
    %c0_i32_0 = arith.constant 0 : i32
    %c0_i32_1 = arith.constant 0 : i32
    return %arg0, %c0_i32, %c0_i32_0 : i32, i32, i32
  }
  func.func @transform_1(%arg0: i32, %arg1: i32) -> (i32, i32) {
    %c0_i32 = arith.constant 0 : i32
    %c0_i32_0 = arith.constant 0 : i32
    return %c0_i32, %arg1 : i32, i32
  }
  func.func @transform_2(%arg0: i32, %arg1: i32) -> (i32, i32) {
    %c0_i32 = arith.constant 0 : i32
    %c0_i32_0 = arith.constant 0 : i32
    return %c0_i32, %arg1 : i32, i32
  }
  func.func @transform_3(%arg0: i32, %arg1: i32) -> (i32, i32) {
    %c0_i32 = arith.constant 0 : i32
    %c0_i32_0 = arith.constant 0 : i32
    return %c0_i32, %arg1 : i32, i32
  }
  func.func @transform_4(%arg0: i32, %arg1: i32) -> (i32, i32) {
    %c0_i32 = arith.constant 0 : i32
    %c0_i32_0 = arith.constant 0 : i32
    return %c0_i32, %arg1 : i32, i32
  }
  func.func @transform_5(%arg0: i32, %arg1: i32) -> (i32, i32, i32) {
    %c0_i32 = arith.constant 0 : i32
    %c0_i32_0 = arith.constant 0 : i32
    %c0_i32_1 = arith.constant 0 : i32
    return %arg0, %c0_i32, %c0_i32_0 : i32, i32, i32
  }
  func.func @transform_6(%arg0: i32, %arg1: i32) -> (i32, i32, i32) {
    %c0_i32 = arith.constant 0 : i32
    %c0_i32_0 = arith.constant 0 : i32
    return %arg0, %c0_i32, %arg1 : i32, i32, i32
  }
}

module attributes {stable_mosaic.version = 11 : i64} {
  func.func @_matmul_bias_kernel(%arg0: i32, %arg1: i32, %arg2: i32, %arg3: memref<32x32xbf16, #tpu.memory_space<vmem>>, %arg4: memref<32x128xbf16, #tpu.memory_space<vmem>>, %arg5: memref<1x128xf32, #tpu.memory_space<vmem>>, %arg6: memref<32x128xbf16, #tpu.memory_space<vmem>>, %arg7: memref<32x128xf32, #tpu.memory_space<vmem>>) attributes {dimension_semantics = [#tpu.dimension_semantics<parallel>, #tpu.dimension_semantics<parallel>, #tpu.dimension_semantics<arbitrary>], iteration_bounds = array<i64: 1, 1, 1>, scalar_prefetch = 0 : i64, scratch_operands = 1 : i64, tpu.core_type = #tpu.core_type<tc>, window_params = [{transform_indices = @transform_0, window_bounds = array<i64: 32, 32>}, {transform_indices = @transform_1, window_bounds = array<i64: 32, 128>}, {transform_indices = @transform_2, window_bounds = array<i64: 1, 128>}, {transform_indices = @transform_3, window_bounds = array<i64: 32, 128>}]} {
    %c0_i32 = arith.constant 0 : i32
    %0 = arith.cmpi eq, %arg2, %c0_i32 : i32
    %1 = arith.extui %0 : i1 to i32
    %c0_i32_0 = arith.constant 0 : i32
    %2 = arith.cmpi ne, %1, %c0_i32_0 : i32
    scf.if %2 {
      %cst_10 = arith.constant 0.000000e+00 : f32
      %12 = vector.broadcast %cst_10 : f32 to vector<32x128xf32>
      %c0_11 = arith.constant 0 : index
      %c0_12 = arith.constant 0 : index
      %13 = vector.load %arg7[%c0_11, %c0_12] : memref<32x128xf32, #tpu.memory_space<vmem>>, vector<32x128xf32>
      tpu.vector_store %arg7[%c0_11, %c0_12], %12 {strides = array<i32>} : memref<32x128xf32, #tpu.memory_space<vmem>>, vector<32x128xf32>,
    } else {
    }
    %c0 = arith.constant 0 : index
    %c0_1 = arith.constant 0 : index
    %3 = vector.load %arg7[%c0, %c0_1] : memref<32x128xf32, #tpu.memory_space<vmem>>, vector<32x128xf32>
    %c0_2 = arith.constant 0 : index
    %c0_3 = arith.constant 0 : index
    %4 = vector.load %arg3[%c0_2, %c0_3] : memref<32x32xbf16, #tpu.memory_space<vmem>>, vector<32x32xbf16>
    %c0_4 = arith.constant 0 : index
    %c0_5 = arith.constant 0 : index
    %5 = vector.load %arg4[%c0_4, %c0_5] : memref<32x128xbf16, #tpu.memory_space<vmem>>, vector<32x128xbf16>
    %cst = arith.constant dense<0.000000e+00> : vector<32x128xf32>
    %6 = tpu.matmul %4, %5, %cst {dimension_numbers = #tpu.dot_dimension_numbers<[1], [0], [0], [1], [0, 0, 1, 1], [], []>} : vector<32x32xbf16>, vector<32x128xbf16>, vector<32x128xf32> -> vector<32x128xf32>
    %7 = arith.addf %3, %6 : vector<32x128xf32>
    %c0_6 = arith.constant 0 : index
    %c0_7 = arith.constant 0 : index
    %8 = vector.load %arg7[%c0_6, %c0_7] : memref<32x128xf32, #tpu.memory_space<vmem>>, vector<32x128xf32>
    tpu.vector_store %arg7[%c0_6, %c0_7], %7 {strides = array<i32>} : memref<32x128xf32, #tpu.memory_space<vmem>>, vector<32x128xf32>,
    %c0_i32_8 = arith.constant 0 : i32
    %9 = arith.cmpi eq, %arg2, %c0_i32_8 : i32
    %10 = arith.extui %9 : i1 to i32
    %c0_i32_9 = arith.constant 0 : i32
    %11 = arith.cmpi ne, %10, %c0_i32_9 : i32
    scf.if %11 {
      %c0_10 = arith.constant 0 : index
      %c0_11 = arith.constant 0 : index
      %12 = vector.load %arg7[%c0_10, %c0_11] : memref<32x128xf32, #tpu.memory_space<vmem>>, vector<32x128xf32>
      %c0_12 = arith.constant 0 : index
      %c0_13 = arith.constant 0 : index
      %13 = vector.load %arg5[%c0_12, %c0_13] : memref<1x128xf32, #tpu.memory_space<vmem>>, vector<1x128xf32>
      %14 = vector.broadcast %13 : vector<1x128xf32> to vector<32x128xf32>
      %15 = arith.addf %12, %14 : vector<32x128xf32>
      %16 = arith.truncf %15 : vector<32x128xf32> to vector<32x128xbf16>
      %c0_14 = arith.constant 0 : index
      %c0_15 = arith.constant 0 : index
      %17 = vector.load %arg6[%c0_14, %c0_15] : memref<32x128xbf16, #tpu.memory_space<vmem>>, vector<32x128xbf16>
      tpu.vector_store %arg6[%c0_14, %c0_15], %16 {strides = array<i32>} : memref<32x128xbf16, #tpu.memory_space<vmem>>, vector<32x128xbf16>,
    } else {
    }
    return
  }
  func.func @transform_0(%arg0: i32, %arg1: i32, %arg2: i32) -> (i32, i32) {
    %c0_i32 = arith.constant 0 : i32
    return %arg0, %arg2 : i32, i32
  }
  func.func @transform_1(%arg0: i32, %arg1: i32, %arg2: i32) -> (i32, i32) {
    %c0_i32 = arith.constant 0 : i32
    return %arg2, %arg1 : i32, i32
  }
  func.func @transform_2(%arg0: i32, %arg1: i32, %arg2: i32) -> (i32, i32) {
    %c0_i32 = arith.constant 0 : i32
    %c0_i32_0 = arith.constant 0 : i32
    return %c0_i32, %arg1 : i32, i32
  }
  func.func @transform_3(%arg0: i32, %arg1: i32, %arg2: i32) -> (i32, i32) {
    %c0_i32 = arith.constant 0 : i32
    return %arg0, %arg1 : i32, i32
  }
}

module attributes {stable_mosaic.version = 11 : i64} {
  func.func @_ln_matmul_kernel(%arg0: i32, %arg1: i32, %arg2: memref<32x32xf32, #tpu.memory_space<vmem>>, %arg3: memref<1x32xf32, #tpu.memory_space<vmem>>, %arg4: memref<1x32xf32, #tpu.memory_space<vmem>>, %arg5: memref<32x128xbf16, #tpu.memory_space<vmem>>, %arg6: memref<1x128xf32, #tpu.memory_space<vmem>>, %arg7: memref<32x128xbf16, #tpu.memory_space<vmem>>) attributes {dimension_semantics = [#tpu.dimension_semantics<parallel>, #tpu.dimension_semantics<parallel>], iteration_bounds = array<i64: 1, 1>, scalar_prefetch = 0 : i64, scratch_operands = 0 : i64, tpu.core_type = #tpu.core_type<tc>, window_params = [{transform_indices = @transform_0, window_bounds = array<i64: 32, 32>}, {pipeline_mode = #tpu.pipeline_mode<synchronous>, transform_indices = @transform_1, window_bounds = array<i64: 1, 32>}, {pipeline_mode = #tpu.pipeline_mode<synchronous>, transform_indices = @transform_2, window_bounds = array<i64: 1, 32>}, {transform_indices = @transform_3, window_bounds = array<i64: 32, 128>}, {transform_indices = @transform_4, window_bounds = array<i64: 1, 128>}, {transform_indices = @transform_5, window_bounds = array<i64: 32, 128>}]} {
    %c0 = arith.constant 0 : index
    %c0_0 = arith.constant 0 : index
    %0 = vector.load %arg2[%c0, %c0_0] : memref<32x32xf32, #tpu.memory_space<vmem>>, vector<32x32xf32>
    %cst = arith.constant dense<0.000000e+00> : vector<32xf32>
    %1 = vector.multi_reduction <add>, %0, %cst [1] : vector<32x32xf32> to vector<32xf32>
    %2 = vector.shape_cast %1 : vector<32xf32> to vector<32x1xf32>
    %cst_1 = arith.constant 3.200000e+01 : f32
    %3 = vector.broadcast %cst_1 : f32 to vector<32x1xf32>
    %4 = arith.divf %2, %3 : vector<32x1xf32>
    %5 = vector.broadcast %4 : vector<32x1xf32> to vector<32x32xf32>
    %6 = arith.subf %0, %5 : vector<32x32xf32>
    %7 = arith.mulf %6, %6 : vector<32x32xf32>
    %cst_2 = arith.constant dense<0.000000e+00> : vector<32xf32>
    %8 = vector.multi_reduction <add>, %7, %cst_2 [1] : vector<32x32xf32> to vector<32xf32>
    %9 = vector.shape_cast %8 : vector<32xf32> to vector<32x1xf32>
    %cst_3 = arith.constant 3.200000e+01 : f32
    %10 = vector.broadcast %cst_3 : f32 to vector<32x1xf32>
    %11 = arith.divf %9, %10 : vector<32x1xf32>
    %12 = vector.broadcast %4 : vector<32x1xf32> to vector<32x32xf32>
    %13 = arith.subf %0, %12 : vector<32x32xf32>
    %cst_4 = arith.constant 9.99999996E-13 : f32
    %14 = vector.broadcast %cst_4 : f32 to vector<32x1xf32>
    %15 = arith.addf %11, %14 : vector<32x1xf32>
    %16 = math.rsqrt %15 : vector<32x1xf32>
    %17 = vector.broadcast %16 : vector<32x1xf32> to vector<32x32xf32>
    %18 = arith.mulf %13, %17 : vector<32x32xf32>
    %c0_5 = arith.constant 0 : index
    %c0_6 = arith.constant 0 : index
    %19 = vector.load %arg3[%c0_5, %c0_6] : memref<1x32xf32, #tpu.memory_space<vmem>>, vector<1x32xf32>
    %20 = vector.broadcast %19 : vector<1x32xf32> to vector<32x32xf32>
    %21 = arith.mulf %18, %20 : vector<32x32xf32>
    %c0_7 = arith.constant 0 : index
    %c0_8 = arith.constant 0 : index
    %22 = vector.load %arg4[%c0_7, %c0_8] : memref<1x32xf32, #tpu.memory_space<vmem>>, vector<1x32xf32>
    %23 = vector.broadcast %22 : vector<1x32xf32> to vector<32x32xf32>
    %24 = arith.addf %21, %23 : vector<32x32xf32>
    %25 = arith.truncf %24 : vector<32x32xf32> to vector<32x32xbf16>
    %c0_9 = arith.constant 0 : index
    %c0_10 = arith.constant 0 : index
    %26 = vector.load %arg5[%c0_9, %c0_10] : memref<32x128xbf16, #tpu.memory_space<vmem>>, vector<32x128xbf16>
    %cst_11 = arith.constant dense<0.000000e+00> : vector<32x128xf32>
    %27 = tpu.matmul %25, %26, %cst_11 {dimension_numbers = #tpu.dot_dimension_numbers<[1], [0], [0], [1], [0, 0, 1, 1], [], []>} : vector<32x32xbf16>, vector<32x128xbf16>, vector<32x128xf32> -> vector<32x128xf32>
    %c0_12 = arith.constant 0 : index
    %c0_13 = arith.constant 0 : index
    %28 = vector.load %arg6[%c0_12, %c0_13] : memref<1x128xf32, #tpu.memory_space<vmem>>, vector<1x128xf32>
    %29 = vector.broadcast %28 : vector<1x128xf32> to vector<32x128xf32>
    %30 = arith.addf %27, %29 : vector<32x128xf32>
    %31 = arith.truncf %30 : vector<32x128xf32> to vector<32x128xbf16>
    %c0_14 = arith.constant 0 : index
    %c0_15 = arith.constant 0 : index
    %32 = vector.load %arg7[%c0_14, %c0_15] : memref<32x128xbf16, #tpu.memory_space<vmem>>, vector<32x128xbf16>
    tpu.vector_store %arg7[%c0_14, %c0_15], %31 {strides = array<i32>} : memref<32x128xbf16, #tpu.memory_space<vmem>>, vector<32x128xbf16>,
    return
  }
  func.func @transform_0(%arg0: i32, %arg1: i32) -> (i32, i32) {
    %c0_i32 = arith.constant 0 : i32
    %c0_i32_0 = arith.constant 0 : i32
    return %arg0, %c0_i32 : i32, i32
  }
  func.func @transform_1(%arg0: i32, %arg1: i32) -> (i32, i32) {
    %c0_i32 = arith.constant 0 : i32
    %c0_i32_0 = arith.constant 0 : i32
    %c0_i32_1 = arith.constant 0 : i32
    return %c0_i32, %c0_i32_0 : i32, i32
  }
  func.func @transform_2(%arg0: i32, %arg1: i32) -> (i32, i32) {
    %c0_i32 = arith.constant 0 : i32
    %c0_i32_0 = arith.constant 0 : i32
    %c0_i32_1 = arith.constant 0 : i32
    return %c0_i32, %c0_i32_0 : i32, i32
  }
  func.func @transform_3(%arg0: i32, %arg1: i32) -> (i32, i32) {
    %c0_i32 = arith.constant 0 : i32
    %c0_i32_0 = arith.constant 0 : i32
    return %c0_i32, %arg1 : i32, i32
  }
  func.func @transform_4(%arg0: i32, %arg1: i32) -> (i32, i32) {
    %c0_i32 = arith.constant 0 : i32
    %c0_i32_0 = arith.constant 0 : i32
    return %c0_i32, %arg1 : i32, i32
  }
  func.func @transform_5(%arg0: i32, %arg1: i32) -> (i32, i32) {
    %c0_i32 = arith.constant 0 : i32
    return %arg0, %arg1 : i32, i32
  }
}

module attributes {stable_mosaic.version = 11 : i64} {
  func.func @_relpos_kernel(%arg0: i32, %arg1: memref<1x16x96xbf16, #tpu.memory_space<vmem>>, %arg2: memref<1x32xf32, #tpu.memory_space<vmem>>, %arg3: memref<31x32xbf16, #tpu.memory_space<vmem>>, %arg4: memref<1x2x16x31xf32, #tpu.memory_space<vmem>>) attributes {dimension_semantics = [#tpu.dimension_semantics<parallel>], iteration_bounds = array<i64: 2>, scalar_prefetch = 0 : i64, scratch_operands = 0 : i64, tpu.core_type = #tpu.core_type<tc>, window_params = [{transform_indices = @transform_0, window_bounds = array<i64: 1, 16, 96>}, {pipeline_mode = #tpu.pipeline_mode<synchronous>, transform_indices = @transform_1, window_bounds = array<i64: 1, 32>}, {pipeline_mode = #tpu.pipeline_mode<synchronous>, transform_indices = @transform_2, window_bounds = array<i64: 31, 32>}, {transform_indices = @transform_3, window_bounds = array<i64: 1, 2, 16, 31>}]} {
    %c0 = arith.constant 0 : index
    %c0_0 = arith.constant 0 : index
    %c0_1 = arith.constant 0 : index
    %0 = vector.load %arg1[%c0, %c0_0, %c0_1] : memref<1x16x96xbf16, #tpu.memory_space<vmem>>, vector<1x16x96xbf16>
    %1 = vector.shape_cast %0 : vector<1x16x96xbf16> to vector<16x96xbf16>
    %c0_2 = arith.constant 0 : index
    %c0_3 = arith.constant 0 : index
    %2 = vector.load %arg3[%c0_2, %c0_3] : memref<31x32xbf16, #tpu.memory_space<vmem>>, vector<31x32xbf16>
    %c0_4 = arith.constant 0 : index
    %c0_5 = arith.constant 0 : index
    %3 = vector.load %arg2[%c0_4, %c0_5] : memref<1x32xf32, #tpu.memory_space<vmem>>, vector<1x32xf32>
    %4 = vector.extract_strided_slice %1 {offsets = [0, 0], sizes = [16, 16], strides = [1, 1]} : vector<16x96xbf16> to vector<16x16xbf16>
    %5 = arith.extf %4 : vector<16x16xbf16> to vector<16x16xf32>
    %6 = vector.extract_strided_slice %3 {offsets = [0, 0], sizes = [1, 16], strides = [1, 1]} : vector<1x32xf32> to vector<1x16xf32>
    %7 = vector.broadcast %6 : vector<1x16xf32> to vector<16x16xf32>
    %8 = arith.addf %5, %7 : vector<16x16xf32>
    %9 = arith.truncf %8 : vector<16x16xf32> to vector<16x16xbf16>
    %10 = vector.extract_strided_slice %2 {offsets = [0, 0], sizes = [31, 16], strides = [1, 1]} : vector<31x32xbf16> to vector<31x16xbf16>
    %cst = arith.constant dense<0.000000e+00> : vector<16x31xf32>
    %11 = tpu.matmul %9, %10, %cst {dimension_numbers = #tpu.dot_dimension_numbers<[1], [1], [0], [0], [0, 0, 1, 0], [], []>} : vector<16x16xbf16>, vector<31x16xbf16>, vector<16x31xf32> -> vector<16x31xf32>
    %c0_6 = arith.constant 0 : index
    %c0_7 = arith.constant 0 : index
    %c0_8 = arith.constant 0 : index
    %c0_9 = arith.constant 0 : index
    %12 = vector.load %arg4[%c0_6, %c0_7, %c0_8, %c0_9] : memref<1x2x16x31xf32, #tpu.memory_space<vmem>>, vector<1x1x16x31xf32>
    %13 = vector.shape_cast %12 : vector<1x1x16x31xf32> to vector<16x31xf32>
    %14 = vector.shape_cast %11 : vector<16x31xf32> to vector<1x1x16x31xf32>
    tpu.vector_store %arg4[%c0_6, %c0_7, %c0_8, %c0_9], %14 {strides = array<i32>} : memref<1x2x16x31xf32, #tpu.memory_space<vmem>>, vector<1x1x16x31xf32>,
    %15 = vector.extract_strided_slice %1 {offsets = [0, 16], sizes = [16, 16], strides = [1, 1]} : vector<16x96xbf16> to vector<16x16xbf16>
    %16 = arith.extf %15 : vector<16x16xbf16> to vector<16x16xf32>
    %17 = vector.extract_strided_slice %3 {offsets = [0, 16], sizes = [1, 16], strides = [1, 1]} : vector<1x32xf32> to vector<1x16xf32>
    %18 = vector.broadcast %17 : vector<1x16xf32> to vector<16x16xf32>
    %19 = arith.addf %16, %18 : vector<16x16xf32>
    %20 = arith.truncf %19 : vector<16x16xf32> to vector<16x16xbf16>
    %21 = vector.extract_strided_slice %2 {offsets = [0, 16], sizes = [31, 16], strides = [1, 1]} : vector<31x32xbf16> to vector<31x16xbf16>
    %cst_10 = arith.constant dense<0.000000e+00> : vector<16x31xf32>
    %22 = tpu.matmul %20, %21, %cst_10 {dimension_numbers = #tpu.dot_dimension_numbers<[1], [1], [0], [0], [0, 0, 1, 0], [], []>} : vector<16x16xbf16>, vector<31x16xbf16>, vector<16x31xf32> -> vector<16x31xf32>
    %c0_11 = arith.constant 0 : index
    %c1 = arith.constant 1 : index
    %c0_12 = arith.constant 0 : index
    %c0_13 = arith.constant 0 : index
    %23 = vector.load %arg4[%c0_11, %c1, %c0_12, %c0_13] : memref<1x2x16x31xf32, #tpu.memory_space<vmem>>, vector<1x1x16x31xf32>
    %24 = vector.shape_cast %23 : vector<1x1x16x31xf32> to vector<16x31xf32>
    %25 = vector.shape_cast %22 : vector<16x31xf32> to vector<1x1x16x31xf32>
    tpu.vector_store %arg4[%c0_11, %c1, %c0_12, %c0_13], %25 {strides = array<i32>} : memref<1x2x16x31xf32, #tpu.memory_space<vmem>>, vector<1x1x16x31xf32>,
    return
  }
  func.func @transform_0(%arg0: i32) -> (i32, i32, i32) {
    %c0_i32 = arith.constant 0 : i32
    %c0_i32_0 = arith.constant 0 : i32
    %c0_i32_1 = arith.constant 0 : i32
    return %arg0, %c0_i32, %c0_i32_0 : i32, i32, i32
  }
  func.func @transform_1(%arg0: i32) -> (i32, i32) {
    %c0_i32 = arith.constant 0 : i32
    %c0_i32_0 = arith.constant 0 : i32
    %c0_i32_1 = arith.constant 0 : i32
    return %c0_i32, %c0_i32_0 : i32, i32
  }
  func.func @transform_2(%arg0: i32) -> (i32, i32) {
    %c0_i32 = arith.constant 0 : i32
    %c0_i32_0 = arith.constant 0 : i32
    %c0_i32_1 = arith.constant 0 : i32
    return %c0_i32, %c0_i32_0 : i32, i32
  }
  func.func @transform_3(%arg0: i32) -> (i32, i32, i32, i32) {
    %c0_i32 = arith.constant 0 : i32
    %c0_i32_0 = arith.constant 0 : i32
    %c0_i32_1 = arith.constant 0 : i32
    %c0_i32_2 = arith.constant 0 : i32
    return %arg0, %c0_i32, %c0_i32_0, %c0_i32_1 : i32, i32, i32, i32
  }
}

module attributes {stable_mosaic.version = 11 : i64} {
  func.func @_attn_kernel(%arg0: i32, %arg1: memref<1x16x96xbf16, #tpu.memory_space<vmem>>, %arg2: memref<1x32xf32, #tpu.memory_space<vmem>>, %arg3: memref<1x2x16x16xf32, #tpu.memory_space<vmem>>, %arg4: memref<1x1x16xf32, #tpu.memory_space<vmem>>, %arg5: memref<32x32xbf16, #tpu.memory_space<vmem>>, %arg6: memref<1x32xf32, #tpu.memory_space<vmem>>, %arg7: memref<1x16x32xf32, #tpu.memory_space<vmem>>, %arg8: memref<1x16x32xf32, #tpu.memory_space<vmem>>) attributes {dimension_semantics = [#tpu.dimension_semantics<parallel>], iteration_bounds = array<i64: 2>, scalar_prefetch = 0 : i64, scratch_operands = 0 : i64, tpu.core_type = #tpu.core_type<tc>, window_params = [{transform_indices = @transform_0, window_bounds = array<i64: 1, 16, 96>}, {pipeline_mode = #tpu.pipeline_mode<synchronous>, transform_indices = @transform_1, window_bounds = array<i64: 1, 32>}, {transform_indices = @transform_2, window_bounds = array<i64: 1, 2, 16, 16>}, {transform_indices = @transform_3, window_bounds = array<i64: 1, 1, 16>}, {pipeline_mode = #tpu.pipeline_mode<synchronous>, transform_indices = @transform_4, window_bounds = array<i64: 32, 32>}, {pipeline_mode = #tpu.pipeline_mode<synchronous>, transform_indices = @transform_5, window_bounds = array<i64: 1, 32>}, {transform_indices = @transform_6, window_bounds = array<i64: 1, 16, 32>}, {transform_indices = @transform_7, window_bounds = array<i64: 1, 16, 32>}]} {
    %c0 = arith.constant 0 : index
    %c0_0 = arith.constant 0 : index
    %c0_1 = arith.constant 0 : index
    %0 = vector.load %arg1[%c0, %c0_0, %c0_1] : memref<1x16x96xbf16, #tpu.memory_space<vmem>>, vector<1x16x96xbf16>
    %1 = vector.shape_cast %0 : vector<1x16x96xbf16> to vector<16x96xbf16>
    %c0_2 = arith.constant 0 : index
    %c0_3 = arith.constant 0 : index
    %2 = vector.load %arg2[%c0_2, %c0_3] : memref<1x32xf32, #tpu.memory_space<vmem>>, vector<1x32xf32>
    %c0_4 = arith.constant 0 : index
    %c0_5 = arith.constant 0 : index
    %c0_6 = arith.constant 0 : index
    %3 = vector.load %arg4[%c0_4, %c0_5, %c0_6] : memref<1x1x16xf32, #tpu.memory_space<vmem>>, vector<1x1x16xf32>
    %4 = vector.shape_cast %3 : vector<1x1x16xf32> to vector<1x16xf32>
    %5 = vector.extract_strided_slice %1 {offsets = [0, 0], sizes = [16, 16], strides = [1, 1]} : vector<16x96xbf16> to vector<16x16xbf16>
    %6 = arith.extf %5 : vector<16x16xbf16> to vector<16x16xf32>
    %7 = vector.extract_strided_slice %2 {offsets = [0, 0], sizes = [1, 16], strides = [1, 1]} : vector<1x32xf32> to vector<1x16xf32>
    %8 = vector.broadcast %7 : vector<1x16xf32> to vector<16x16xf32>
    %9 = arith.addf %6, %8 : vector<16x16xf32>
    %10 = arith.truncf %9 : vector<16x16xf32> to vector<16x16xbf16>
    %11 = vector.extract_strided_slice %1 {offsets = [0, 32], sizes = [16, 16], strides = [1, 1]} : vector<16x96xbf16> to vector<16x16xbf16>
    %12 = vector.extract_strided_slice %1 {offsets = [0, 64], sizes = [16, 16], strides = [1, 1]} : vector<16x96xbf16> to vector<16x16xbf16>
    %cst = arith.constant dense<0.000000e+00> : vector<16x16xf32>
    %13 = tpu.matmul %10, %11, %cst {dimension_numbers = #tpu.dot_dimension_numbers<[1], [1], [0], [0], [0, 0, 1, 0], [], []>} : vector<16x16xbf16>, vector<16x16xbf16>, vector<16x16xf32> -> vector<16x16xf32>
    %c0_7 = arith.constant 0 : index
    %c0_8 = arith.constant 0 : index
    %c0_9 = arith.constant 0 : index
    %c0_10 = arith.constant 0 : index
    %14 = vector.load %arg3[%c0_7, %c0_8, %c0_9, %c0_10] : memref<1x2x16x16xf32, #tpu.memory_space<vmem>>, vector<1x1x16x16xf32>
    %15 = vector.shape_cast %14 : vector<1x1x16x16xf32> to vector<16x16xf32>
    %16 = arith.addf %13, %15 : vector<16x16xf32>
    %cst_11 = arith.constant 2.500000e-01 : f32
    %17 = vector.broadcast %cst_11 : f32 to vector<16x16xf32>
    %18 = arith.mulf %16, %17 : vector<16x16xf32>
    %cst_12 = arith.constant 0.000000e+00 : f32
    %19 = vector.broadcast %cst_12 : f32 to vector<1x16xf32>
    %20 = arith.cmpf oeq, %4, %19 : vector<1x16xf32>
    %cst_13 = arith.constant -3.40282347E+38 : f32
    %21 = vector.shape_cast %20 : vector<1x16xi1> to vector<1x16xi1>
    %22 = vector.broadcast %21 : vector<1x16xi1> to vector<16x16xi1>
    %23 = vector.broadcast %cst_13 : f32 to vector<16x16xf32>
    %24 = arith.select %22, %23, %18 : vector<16x16xi1>, vector<16x16xf32>
    %cst_14 = arith.constant dense<0xFF800000> : vector<16xf32>
    %25 = vector.multi_reduction <maximumf>, %24, %cst_14 [1] : vector<16x16xf32> to vector<16xf32>
    %26 = vector.shape_cast %25 : vector<16xf32> to vector<16x1xf32>
    %27 = vector.broadcast %26 : vector<16x1xf32> to vector<16x16xf32>
    %28 = arith.subf %24, %27 : vector<16x16xf32>
    %29 = math.exp %28 : vector<16x16xf32>
    %cst_15 = arith.constant dense<0.000000e+00> : vector<16xf32>
    %30 = vector.multi_reduction <add>, %29, %cst_15 [1] : vector<16x16xf32> to vector<16xf32>
    %31 = vector.shape_cast %30 : vector<16xf32> to vector<16x1xf32>
    %32 = tpu.reciprocal %31 {approx = true} : vector<16x1xf32> -> vector<16x1xf32>
    %33 = vector.broadcast %32 : vector<16x1xf32> to vector<16x16xf32>
    %34 = arith.mulf %29, %33 : vector<16x16xf32>
    %cst_16 = arith.constant 0.000000e+00 : f32
    %35 = vector.broadcast %cst_16 : f32 to vector<1x16xf32>
    %36 = arith.cmpf oeq, %4, %35 : vector<1x16xf32>
    %cst_17 = arith.constant 0.000000e+00 : f32
    %37 = vector.shape_cast %36 : vector<1x16xi1> to vector<1x16xi1>
    %38 = vector.broadcast %37 : vector<1x16xi1> to vector<16x16xi1>
    %39 = vector.broadcast %cst_17 : f32 to vector<16x16xf32>
    %40 = arith.select %38, %39, %34 : vector<16x16xi1>, vector<16x16xf32>
    %41 = arith.truncf %40 : vector<16x16xf32> to vector<16x16xbf16>
    %cst_18 = arith.constant dense<0.000000e+00> : vector<16x16xf32>
    %42 = tpu.matmul %41, %12, %cst_18 {dimension_numbers = #tpu.dot_dimension_numbers<[1], [0], [0], [1], [0, 0, 1, 1], [], []>} : vector<16x16xbf16>, vector<16x16xbf16>, vector<16x16xf32> -> vector<16x16xf32>
    %43 = vector.extract_strided_slice %1 {offsets = [0, 16], sizes = [16, 16], strides = [1, 1]} : vector<16x96xbf16> to vector<16x16xbf16>
    %44 = arith.extf %43 : vector<16x16xbf16> to vector<16x16xf32>
    %45 = vector.extract_strided_slice %2 {offsets = [0, 16], sizes = [1, 16], strides = [1, 1]} : vector<1x32xf32> to vector<1x16xf32>
    %46 = vector.broadcast %45 : vector<1x16xf32> to vector<16x16xf32>
    %47 = arith.addf %44, %46 : vector<16x16xf32>
    %48 = arith.truncf %47 : vector<16x16xf32> to vector<16x16xbf16>
    %49 = vector.extract_strided_slice %1 {offsets = [0, 48], sizes = [16, 16], strides = [1, 1]} : vector<16x96xbf16> to vector<16x16xbf16>
    %50 = vector.extract_strided_slice %1 {offsets = [0, 80], sizes = [16, 16], strides = [1, 1]} : vector<16x96xbf16> to vector<16x16xbf16>
    %cst_19 = arith.constant dense<0.000000e+00> : vector<16x16xf32>
    %51 = tpu.matmul %48, %49, %cst_19 {dimension_numbers = #tpu.dot_dimension_numbers<[1], [1], [0], [0], [0, 0, 1, 0], [], []>} : vector<16x16xbf16>, vector<16x16xbf16>, vector<16x16xf32> -> vector<16x16xf32>
    %c0_20 = arith.constant 0 : index
    %c1 = arith.constant 1 : index
    %c0_21 = arith.constant 0 : index
    %c0_22 = arith.constant 0 : index
    %52 = vector.load %arg3[%c0_20, %c1, %c0_21, %c0_22] : memref<1x2x16x16xf32, #tpu.memory_space<vmem>>, vector<1x1x16x16xf32>
    %53 = vector.shape_cast %52 : vector<1x1x16x16xf32> to vector<16x16xf32>
    %54 = arith.addf %51, %53 : vector<16x16xf32>
    %cst_23 = arith.constant 2.500000e-01 : f32
    %55 = vector.broadcast %cst_23 : f32 to vector<16x16xf32>
    %56 = arith.mulf %54, %55 : vector<16x16xf32>
    %cst_24 = arith.constant 0.000000e+00 : f32
    %57 = vector.broadcast %cst_24 : f32 to vector<1x16xf32>
    %58 = arith.cmpf oeq, %4, %57 : vector<1x16xf32>
    %cst_25 = arith.constant -3.40282347E+38 : f32
    %59 = vector.shape_cast %58 : vector<1x16xi1> to vector<1x16xi1>
    %60 = vector.broadcast %59 : vector<1x16xi1> to vector<16x16xi1>
    %61 = vector.broadcast %cst_25 : f32 to vector<16x16xf32>
    %62 = arith.select %60, %61, %56 : vector<16x16xi1>, vector<16x16xf32>
    %cst_26 = arith.constant dense<0xFF800000> : vector<16xf32>
    %63 = vector.multi_reduction <maximumf>, %62, %cst_26 [1] : vector<16x16xf32> to vector<16xf32>
    %64 = vector.shape_cast %63 : vector<16xf32> to vector<16x1xf32>
    %65 = vector.broadcast %64 : vector<16x1xf32> to vector<16x16xf32>
    %66 = arith.subf %62, %65 : vector<16x16xf32>
    %67 = math.exp %66 : vector<16x16xf32>
    %cst_27 = arith.constant dense<0.000000e+00> : vector<16xf32>
    %68 = vector.multi_reduction <add>, %67, %cst_27 [1] : vector<16x16xf32> to vector<16xf32>
    %69 = vector.shape_cast %68 : vector<16xf32> to vector<16x1xf32>
    %70 = tpu.reciprocal %69 {approx = true} : vector<16x1xf32> -> vector<16x1xf32>
    %71 = vector.broadcast %70 : vector<16x1xf32> to vector<16x16xf32>
    %72 = arith.mulf %67, %71 : vector<16x16xf32>
    %cst_28 = arith.constant 0.000000e+00 : f32
    %73 = vector.broadcast %cst_28 : f32 to vector<1x16xf32>
    %74 = arith.cmpf oeq, %4, %73 : vector<1x16xf32>
    %cst_29 = arith.constant 0.000000e+00 : f32
    %75 = vector.shape_cast %74 : vector<1x16xi1> to vector<1x16xi1>
    %76 = vector.broadcast %75 : vector<1x16xi1> to vector<16x16xi1>
    %77 = vector.broadcast %cst_29 : f32 to vector<16x16xf32>
    %78 = arith.select %76, %77, %72 : vector<16x16xi1>, vector<16x16xf32>
    %79 = arith.truncf %78 : vector<16x16xf32> to vector<16x16xbf16>
    %cst_30 = arith.constant dense<0.000000e+00> : vector<16x16xf32>
    %80 = tpu.matmul %79, %50, %cst_30 {dimension_numbers = #tpu.dot_dimension_numbers<[1], [0], [0], [1], [0, 0, 1, 1], [], []>} : vector<16x16xbf16>, vector<16x16xbf16>, vector<16x16xf32> -> vector<16x16xf32>
    %81 = tpu.concatenate %42, %80 in 1 : vector<16x16xf32>, vector<16x16xf32> -> vector<16x32xf32>
    %82 = arith.truncf %81 : vector<16x32xf32> to vector<16x32xbf16>
    %c0_31 = arith.constant 0 : index
    %c0_32 = arith.constant 0 : index
    %83 = vector.load %arg5[%c0_31, %c0_32] : memref<32x32xbf16, #tpu.memory_space<vmem>>, vector<32x32xbf16>
    %cst_33 = arith.constant dense<0.000000e+00> : vector<16x32xf32>
    %84 = tpu.matmul %82, %83, %cst_33 {dimension_numbers = #tpu.dot_dimension_numbers<[1], [0], [0], [1], [0, 0, 1, 1], [], []>} : vector<16x32xbf16>, vector<32x32xbf16>, vector<16x32xf32> -> vector<16x32xf32>
    %c0_34 = arith.constant 0 : index
    %c0_35 = arith.constant 0 : index
    %85 = vector.load %arg6[%c0_34, %c0_35] : memref<1x32xf32, #tpu.memory_space<vmem>>, vector<1x32xf32>
    %86 = vector.broadcast %85 : vector<1x32xf32> to vector<16x32xf32>
    %87 = arith.addf %84, %86 : vector<16x32xf32>
    %c0_36 = arith.constant 0 : index
    %c0_37 = arith.constant 0 : index
    %c0_38 = arith.constant 0 : index
    %88 = vector.load %arg7[%c0_36, %c0_37, %c0_38] : memref<1x16x32xf32, #tpu.memory_space<vmem>>, vector<1x16x32xf32>
    %89 = vector.shape_cast %88 : vector<1x16x32xf32> to vector<16x32xf32>
    %90 = arith.addf %87, %89 : vector<16x32xf32>
    %c0_39 = arith.constant 0 : index
    %c0_40 = arith.constant 0 : index
    %c0_41 = arith.constant 0 : index
    %91 = vector.load %arg8[%c0_39, %c0_40, %c0_41] : memref<1x16x32xf32, #tpu.memory_space<vmem>>, vector<1x16x32xf32>
    %92 = vector.shape_cast %91 : vector<1x16x32xf32> to vector<16x32xf32>
    %93 = vector.shape_cast %90 : vector<16x32xf32> to vector<1x16x32xf32>
    tpu.vector_store %arg8[%c0_39, %c0_40, %c0_41], %93 {strides = array<i32>} : memref<1x16x32xf32, #tpu.memory_space<vmem>>, vector<1x16x32xf32>,
    return
  }
  func.func @transform_0(%arg0: i32) -> (i32, i32, i32) {
    %c0_i32 = arith.constant 0 : i32
    %c0_i32_0 = arith.constant 0 : i32
    %c0_i32_1 = arith.constant 0 : i32
    return %arg0, %c0_i32, %c0_i32_0 : i32, i32, i32
  }
  func.func @transform_1(%arg0: i32) -> (i32, i32) {
    %c0_i32 = arith.constant 0 : i32
    %c0_i32_0 = arith.constant 0 : i32
    %c0_i32_1 = arith.constant 0 : i32
    return %c0_i32, %c0_i32_0 : i32, i32
  }
  func.func @transform_2(%arg0: i32) -> (i32, i32, i32, i32) {
    %c0_i32 = arith.constant 0 : i32
    %c0_i32_0 = arith.constant 0 : i32
    %c0_i32_1 = arith.constant 0 : i32
    %c0_i32_2 = arith.constant 0 : i32
    return %arg0, %c0_i32, %c0_i32_0, %c0_i32_1 : i32, i32, i32, i32
  }
  func.func @transform_3(%arg0: i32) -> (i32, i32, i32) {
    %c0_i32 = arith.constant 0 : i32
    %c0_i32_0 = arith.constant 0 : i32
    %c0_i32_1 = arith.constant 0 : i32
    return %arg0, %c0_i32, %c0_i32_0 : i32, i32, i32
  }
  func.func @transform_4(%arg0: i32) -> (i32, i32) {
    %c0_i32 = arith.constant 0 : i32
    %c0_i32_0 = arith.constant 0 : i32
    %c0_i32_1 = arith.constant 0 : i32
    return %c0_i32, %c0_i32_0 : i32, i32
  }
  func.func @transform_5(%arg0: i32) -> (i32, i32) {
    %c0_i32 = arith.constant 0 : i32
    %c0_i32_0 = arith.constant 0 : i32
    %c0_i32_1 = arith.constant 0 : i32
    return %c0_i32, %c0_i32_0 : i32, i32
  }
  func.func @transform_6(%arg0: i32) -> (i32, i32, i32) {
    %c0_i32 = arith.constant 0 : i32
    %c0_i32_0 = arith.constant 0 : i32
    %c0_i32_1 = arith.constant 0 : i32
    return %arg0, %c0_i32, %c0_i32_0 : i32, i32, i32
  }
  func.func @transform_7(%arg0: i32) -> (i32, i32, i32) {
    %c0_i32 = arith.constant 0 : i32
    %c0_i32_0 = arith.constant 0 : i32
    %c0_i32_1 = arith.constant 0 : i32
    return %arg0, %c0_i32, %c0_i32_0 : i32, i32, i32
  }
}

module attributes {stable_mosaic.version = 11 : i64} {
  func.func @_layernorm_kernel(%arg0: i32, %arg1: memref<32x32xf32, #tpu.memory_space<vmem>>, %arg2: memref<1x32xf32, #tpu.memory_space<vmem>>, %arg3: memref<1x32xf32, #tpu.memory_space<vmem>>, %arg4: memref<32x32xbf16, #tpu.memory_space<vmem>>) attributes {dimension_semantics = [#tpu.dimension_semantics<parallel>], iteration_bounds = array<i64: 1>, scalar_prefetch = 0 : i64, scratch_operands = 0 : i64, tpu.core_type = #tpu.core_type<tc>, window_params = [{transform_indices = @transform_0, window_bounds = array<i64: 32, 32>}, {pipeline_mode = #tpu.pipeline_mode<synchronous>, transform_indices = @transform_1, window_bounds = array<i64: 1, 32>}, {pipeline_mode = #tpu.pipeline_mode<synchronous>, transform_indices = @transform_2, window_bounds = array<i64: 1, 32>}, {transform_indices = @transform_3, window_bounds = array<i64: 32, 32>}]} {
    %c0 = arith.constant 0 : index
    %c0_0 = arith.constant 0 : index
    %0 = vector.load %arg1[%c0, %c0_0] : memref<32x32xf32, #tpu.memory_space<vmem>>, vector<32x32xf32>
    %cst = arith.constant dense<0.000000e+00> : vector<32xf32>
    %1 = vector.multi_reduction <add>, %0, %cst [1] : vector<32x32xf32> to vector<32xf32>
    %2 = vector.shape_cast %1 : vector<32xf32> to vector<32x1xf32>
    %cst_1 = arith.constant 3.200000e+01 : f32
    %3 = vector.broadcast %cst_1 : f32 to vector<32x1xf32>
    %4 = arith.divf %2, %3 : vector<32x1xf32>
    %5 = vector.broadcast %4 : vector<32x1xf32> to vector<32x32xf32>
    %6 = arith.subf %0, %5 : vector<32x32xf32>
    %7 = arith.mulf %6, %6 : vector<32x32xf32>
    %cst_2 = arith.constant dense<0.000000e+00> : vector<32xf32>
    %8 = vector.multi_reduction <add>, %7, %cst_2 [1] : vector<32x32xf32> to vector<32xf32>
    %9 = vector.shape_cast %8 : vector<32xf32> to vector<32x1xf32>
    %cst_3 = arith.constant 3.200000e+01 : f32
    %10 = vector.broadcast %cst_3 : f32 to vector<32x1xf32>
    %11 = arith.divf %9, %10 : vector<32x1xf32>
    %12 = vector.broadcast %4 : vector<32x1xf32> to vector<32x32xf32>
    %13 = arith.subf %0, %12 : vector<32x32xf32>
    %cst_4 = arith.constant 9.99999996E-13 : f32
    %14 = vector.broadcast %cst_4 : f32 to vector<32x1xf32>
    %15 = arith.addf %11, %14 : vector<32x1xf32>
    %16 = math.rsqrt %15 : vector<32x1xf32>
    %17 = vector.broadcast %16 : vector<32x1xf32> to vector<32x32xf32>
    %18 = arith.mulf %13, %17 : vector<32x32xf32>
    %c0_5 = arith.constant 0 : index
    %c0_6 = arith.constant 0 : index
    %19 = vector.load %arg2[%c0_5, %c0_6] : memref<1x32xf32, #tpu.memory_space<vmem>>, vector<1x32xf32>
    %20 = vector.broadcast %19 : vector<1x32xf32> to vector<32x32xf32>
    %21 = arith.mulf %18, %20 : vector<32x32xf32>
    %c0_7 = arith.constant 0 : index
    %c0_8 = arith.constant 0 : index
    %22 = vector.load %arg3[%c0_7, %c0_8] : memref<1x32xf32, #tpu.memory_space<vmem>>, vector<1x32xf32>
    %23 = vector.broadcast %22 : vector<1x32xf32> to vector<32x32xf32>
    %24 = arith.addf %21, %23 : vector<32x32xf32>
    %25 = arith.truncf %24 : vector<32x32xf32> to vector<32x32xbf16>
    %c0_9 = arith.constant 0 : index
    %c0_10 = arith.constant 0 : index
    %26 = vector.load %arg4[%c0_9, %c0_10] : memref<32x32xbf16, #tpu.memory_space<vmem>>, vector<32x32xbf16>
    tpu.vector_store %arg4[%c0_9, %c0_10], %25 {strides = array<i32>} : memref<32x32xbf16, #tpu.memory_space<vmem>>, vector<32x32xbf16>,
    return
  }
  func.func @transform_0(%arg0: i32) -> (i32, i32) {
    %c0_i32 = arith.constant 0 : i32
    %c0_i32_0 = arith.constant 0 : i32
    return %arg0, %c0_i32 : i32, i32
  }
  func.func @transform_1(%arg0: i32) -> (i32, i32) {
    %c0_i32 = arith.constant 0 : i32
    %c0_i32_0 = arith.constant 0 : i32
    %c0_i32_1 = arith.constant 0 : i32
    return %c0_i32, %c0_i32_0 : i32, i32
  }
  func.func @transform_2(%arg0: i32) -> (i32, i32) {
    %c0_i32 = arith.constant 0 : i32
    %c0_i32_0 = arith.constant 0 : i32
    %c0_i32_1 = arith.constant 0 : i32
    return %c0_i32, %c0_i32_0 : i32, i32
  }
  func.func @transform_3(%arg0: i32) -> (i32, i32) {
    %c0_i32 = arith.constant 0 : i32
    %c0_i32_0 = arith.constant 0 : i32
    return %arg0, %c0_i32 : i32, i32
  }
}

module attributes {stable_mosaic.version = 11 : i64} {
  func.func @_conv3_kernel(%arg0: i32, %arg1: i32, %arg2: memref<1x18x32xbf16, #tpu.memory_space<vmem>>, %arg3: memref<32x128xbf16, #tpu.memory_space<vmem>>, %arg4: memref<32x128xbf16, #tpu.memory_space<vmem>>, %arg5: memref<32x128xbf16, #tpu.memory_space<vmem>>, %arg6: memref<1x128xf32, #tpu.memory_space<vmem>>, %arg7: memref<1x16x128xbf16, #tpu.memory_space<vmem>>) attributes {dimension_semantics = [#tpu.dimension_semantics<parallel>, #tpu.dimension_semantics<parallel>], iteration_bounds = array<i64: 2, 1>, scalar_prefetch = 0 : i64, scratch_operands = 0 : i64, tpu.core_type = #tpu.core_type<tc>, window_params = [{transform_indices = @transform_0, window_bounds = array<i64: 1, 18, 32>}, {transform_indices = @transform_1, window_bounds = array<i64: 32, 128>}, {transform_indices = @transform_2, window_bounds = array<i64: 32, 128>}, {transform_indices = @transform_3, window_bounds = array<i64: 32, 128>}, {transform_indices = @transform_4, window_bounds = array<i64: 1, 128>}, {transform_indices = @transform_5, window_bounds = array<i64: 1, 16, 128>}]} {
    %c0 = arith.constant 0 : index
    %c0_0 = arith.constant 0 : index
    %c0_1 = arith.constant 0 : index
    %0 = vector.load %arg2[%c0, %c0_0, %c0_1] : memref<1x18x32xbf16, #tpu.memory_space<vmem>>, vector<1x16x32xbf16>
    %1 = vector.shape_cast %0 : vector<1x16x32xbf16> to vector<16x32xbf16>
    %c0_2 = arith.constant 0 : index
    %c0_3 = arith.constant 0 : index
    %2 = vector.load %arg3[%c0_2, %c0_3] : memref<32x128xbf16, #tpu.memory_space<vmem>>, vector<32x128xbf16>
    %cst = arith.constant dense<0.000000e+00> : vector<16x128xf32>
    %3 = tpu.matmul %1, %2, %cst {dimension_numbers = #tpu.dot_dimension_numbers<[1], [0], [0], [1], [0, 0, 1, 1], [], []>} : vector<16x32xbf16>, vector<32x128xbf16>, vector<16x128xf32> -> vector<16x128xf32>
    %c0_4 = arith.constant 0 : index
    %c1 = arith.constant 1 : index
    %c0_5 = arith.constant 0 : index
    %4 = vector.load %arg2[%c0_4, %c1, %c0_5] : memref<1x18x32xbf16, #tpu.memory_space<vmem>>, vector<1x16x32xbf16>
    %5 = vector.shape_cast %4 : vector<1x16x32xbf16> to vector<16x32xbf16>
    %c0_6 = arith.constant 0 : index
    %c0_7 = arith.constant 0 : index
    %6 = vector.load %arg4[%c0_6, %c0_7] : memref<32x128xbf16, #tpu.memory_space<vmem>>, vector<32x128xbf16>
    %cst_8 = arith.constant dense<0.000000e+00> : vector<16x128xf32>
    %7 = tpu.matmul %5, %6, %cst_8 {dimension_numbers = #tpu.dot_dimension_numbers<[1], [0], [0], [1], [0, 0, 1, 1], [], []>} : vector<16x32xbf16>, vector<32x128xbf16>, vector<16x128xf32> -> vector<16x128xf32>
    %8 = arith.addf %3, %7 : vector<16x128xf32>
    %c0_9 = arith.constant 0 : index
    %c2 = arith.constant 2 : index
    %c0_10 = arith.constant 0 : index
    %9 = vector.load %arg2[%c0_9, %c2, %c0_10] : memref<1x18x32xbf16, #tpu.memory_space<vmem>>, vector<1x16x32xbf16>
    %10 = vector.shape_cast %9 : vector<1x16x32xbf16> to vector<16x32xbf16>
    %c0_11 = arith.constant 0 : index
    %c0_12 = arith.constant 0 : index
    %11 = vector.load %arg5[%c0_11, %c0_12] : memref<32x128xbf16, #tpu.memory_space<vmem>>, vector<32x128xbf16>
    %cst_13 = arith.constant dense<0.000000e+00> : vector<16x128xf32>
    %12 = tpu.matmul %10, %11, %cst_13 {dimension_numbers = #tpu.dot_dimension_numbers<[1], [0], [0], [1], [0, 0, 1, 1], [], []>} : vector<16x32xbf16>, vector<32x128xbf16>, vector<16x128xf32> -> vector<16x128xf32>
    %13 = arith.addf %8, %12 : vector<16x128xf32>
    %c0_14 = arith.constant 0 : index
    %c0_15 = arith.constant 0 : index
    %14 = vector.load %arg6[%c0_14, %c0_15] : memref<1x128xf32, #tpu.memory_space<vmem>>, vector<1x128xf32>
    %15 = vector.broadcast %14 : vector<1x128xf32> to vector<16x128xf32>
    %16 = arith.addf %13, %15 : vector<16x128xf32>
    %cst_16 = arith.constant 0.000000e+00 : f32
    %17 = vector.broadcast %cst_16 : f32 to vector<16x128xf32>
    %18 = arith.maximumf %16, %17 : vector<16x128xf32>
    %19 = arith.truncf %18 : vector<16x128xf32> to vector<16x128xbf16>
    %c0_17 = arith.constant 0 : index
    %c0_18 = arith.constant 0 : index
    %c0_19 = arith.constant 0 : index
    %20 = vector.load %arg7[%c0_17, %c0_18, %c0_19] : memref<1x16x128xbf16, #tpu.memory_space<vmem>>, vector<1x16x128xbf16>
    %21 = vector.shape_cast %20 : vector<1x16x128xbf16> to vector<16x128xbf16>
    %22 = vector.shape_cast %19 : vector<16x128xbf16> to vector<1x16x128xbf16>
    tpu.vector_store %arg7[%c0_17, %c0_18, %c0_19], %22 {strides = array<i32>} : memref<1x16x128xbf16, #tpu.memory_space<vmem>>, vector<1x16x128xbf16>,
    return
  }
  func.func @transform_0(%arg0: i32, %arg1: i32) -> (i32, i32, i32) {
    %c0_i32 = arith.constant 0 : i32
    %c0_i32_0 = arith.constant 0 : i32
    %c0_i32_1 = arith.constant 0 : i32
    return %arg0, %c0_i32, %c0_i32_0 : i32, i32, i32
  }
  func.func @transform_1(%arg0: i32, %arg1: i32) -> (i32, i32) {
    %c0_i32 = arith.constant 0 : i32
    %c0_i32_0 = arith.constant 0 : i32
    return %c0_i32, %arg1 : i32, i32
  }
  func.func @transform_2(%arg0: i32, %arg1: i32) -> (i32, i32) {
    %c0_i32 = arith.constant 0 : i32
    %c0_i32_0 = arith.constant 0 : i32
    return %c0_i32, %arg1 : i32, i32
  }
  func.func @transform_3(%arg0: i32, %arg1: i32) -> (i32, i32) {
    %c0_i32 = arith.constant 0 : i32
    %c0_i32_0 = arith.constant 0 : i32
    return %c0_i32, %arg1 : i32, i32
  }
  func.func @transform_4(%arg0: i32, %arg1: i32) -> (i32, i32) {
    %c0_i32 = arith.constant 0 : i32
    %c0_i32_0 = arith.constant 0 : i32
    return %c0_i32, %arg1 : i32, i32
  }
  func.func @transform_5(%arg0: i32, %arg1: i32) -> (i32, i32, i32) {
    %c0_i32 = arith.constant 0 : i32
    %c0_i32_0 = arith.constant 0 : i32
    return %arg0, %c0_i32, %arg1 : i32, i32, i32
  }
}

module attributes {stable_mosaic.version = 11 : i64} {
  func.func @_conv3_kernel(%arg0: i32, %arg1: i32, %arg2: memref<1x18x64xbf16, #tpu.memory_space<vmem>>, %arg3: memref<64x128xbf16, #tpu.memory_space<vmem>>, %arg4: memref<64x128xbf16, #tpu.memory_space<vmem>>, %arg5: memref<64x128xbf16, #tpu.memory_space<vmem>>, %arg6: memref<1x128xf32, #tpu.memory_space<vmem>>, %arg7: memref<1x16x128xf32, #tpu.memory_space<vmem>>, %arg8: memref<1x16x128xf32, #tpu.memory_space<vmem>>) attributes {dimension_semantics = [#tpu.dimension_semantics<parallel>, #tpu.dimension_semantics<parallel>], iteration_bounds = array<i64: 2, 1>, scalar_prefetch = 0 : i64, scratch_operands = 0 : i64, tpu.core_type = #tpu.core_type<tc>, window_params = [{transform_indices = @transform_0, window_bounds = array<i64: 1, 18, 64>}, {transform_indices = @transform_1, window_bounds = array<i64: 64, 128>}, {transform_indices = @transform_2, window_bounds = array<i64: 64, 128>}, {transform_indices = @transform_3, window_bounds = array<i64: 64, 128>}, {transform_indices = @transform_4, window_bounds = array<i64: 1, 128>}, {transform_indices = @transform_5, window_bounds = array<i64: 1, 16, 128>}, {transform_indices = @transform_6, window_bounds = array<i64: 1, 16, 128>}]} {
    %c0 = arith.constant 0 : index
    %c0_0 = arith.constant 0 : index
    %c0_1 = arith.constant 0 : index
    %0 = vector.load %arg2[%c0, %c0_0, %c0_1] : memref<1x18x64xbf16, #tpu.memory_space<vmem>>, vector<1x16x64xbf16>
    %1 = vector.shape_cast %0 : vector<1x16x64xbf16> to vector<16x64xbf16>
    %c0_2 = arith.constant 0 : index
    %c0_3 = arith.constant 0 : index
    %2 = vector.load %arg3[%c0_2, %c0_3] : memref<64x128xbf16, #tpu.memory_space<vmem>>, vector<64x128xbf16>
    %cst = arith.constant dense<0.000000e+00> : vector<16x128xf32>
    %3 = tpu.matmul %1, %2, %cst {dimension_numbers = #tpu.dot_dimension_numbers<[1], [0], [0], [1], [0, 0, 1, 1], [], []>} : vector<16x64xbf16>, vector<64x128xbf16>, vector<16x128xf32> -> vector<16x128xf32>
    %c0_4 = arith.constant 0 : index
    %c1 = arith.constant 1 : index
    %c0_5 = arith.constant 0 : index
    %4 = vector.load %arg2[%c0_4, %c1, %c0_5] : memref<1x18x64xbf16, #tpu.memory_space<vmem>>, vector<1x16x64xbf16>
    %5 = vector.shape_cast %4 : vector<1x16x64xbf16> to vector<16x64xbf16>
    %c0_6 = arith.constant 0 : index
    %c0_7 = arith.constant 0 : index
    %6 = vector.load %arg4[%c0_6, %c0_7] : memref<64x128xbf16, #tpu.memory_space<vmem>>, vector<64x128xbf16>
    %cst_8 = arith.constant dense<0.000000e+00> : vector<16x128xf32>
    %7 = tpu.matmul %5, %6, %cst_8 {dimension_numbers = #tpu.dot_dimension_numbers<[1], [0], [0], [1], [0, 0, 1, 1], [], []>} : vector<16x64xbf16>, vector<64x128xbf16>, vector<16x128xf32> -> vector<16x128xf32>
    %8 = arith.addf %3, %7 : vector<16x128xf32>
    %c0_9 = arith.constant 0 : index
    %c2 = arith.constant 2 : index
    %c0_10 = arith.constant 0 : index
    %9 = vector.load %arg2[%c0_9, %c2, %c0_10] : memref<1x18x64xbf16, #tpu.memory_space<vmem>>, vector<1x16x64xbf16>
    %10 = vector.shape_cast %9 : vector<1x16x64xbf16> to vector<16x64xbf16>
    %c0_11 = arith.constant 0 : index
    %c0_12 = arith.constant 0 : index
    %11 = vector.load %arg5[%c0_11, %c0_12] : memref<64x128xbf16, #tpu.memory_space<vmem>>, vector<64x128xbf16>
    %cst_13 = arith.constant dense<0.000000e+00> : vector<16x128xf32>
    %12 = tpu.matmul %10, %11, %cst_13 {dimension_numbers = #tpu.dot_dimension_numbers<[1], [0], [0], [1], [0, 0, 1, 1], [], []>} : vector<16x64xbf16>, vector<64x128xbf16>, vector<16x128xf32> -> vector<16x128xf32>
    %13 = arith.addf %8, %12 : vector<16x128xf32>
    %c0_14 = arith.constant 0 : index
    %c0_15 = arith.constant 0 : index
    %14 = vector.load %arg6[%c0_14, %c0_15] : memref<1x128xf32, #tpu.memory_space<vmem>>, vector<1x128xf32>
    %15 = vector.broadcast %14 : vector<1x128xf32> to vector<16x128xf32>
    %16 = arith.addf %13, %15 : vector<16x128xf32>
    %c0_16 = arith.constant 0 : index
    %c0_17 = arith.constant 0 : index
    %c0_18 = arith.constant 0 : index
    %17 = vector.load %arg7[%c0_16, %c0_17, %c0_18] : memref<1x16x128xf32, #tpu.memory_space<vmem>>, vector<1x16x128xf32>
    %18 = vector.shape_cast %17 : vector<1x16x128xf32> to vector<16x128xf32>
    %19 = arith.addf %16, %18 : vector<16x128xf32>
    %c0_19 = arith.constant 0 : index
    %c0_20 = arith.constant 0 : index
    %c0_21 = arith.constant 0 : index
    %20 = vector.load %arg8[%c0_19, %c0_20, %c0_21] : memref<1x16x128xf32, #tpu.memory_space<vmem>>, vector<1x16x128xf32>
    %21 = vector.shape_cast %20 : vector<1x16x128xf32> to vector<16x128xf32>
    %22 = vector.shape_cast %19 : vector<16x128xf32> to vector<1x16x128xf32>
    tpu.vector_store %arg8[%c0_19, %c0_20, %c0_21], %22 {strides = array<i32>} : memref<1x16x128xf32, #tpu.memory_space<vmem>>, vector<1x16x128xf32>,
    return
  }
  func.func @transform_0(%arg0: i32, %arg1: i32) -> (i32, i32, i32) {
    %c0_i32 = arith.constant 0 : i32
    %c0_i32_0 = arith.constant 0 : i32
    %c0_i32_1 = arith.constant 0 : i32
    return %arg0, %c0_i32, %c0_i32_0 : i32, i32, i32
  }
  func.func @transform_1(%arg0: i32, %arg1: i32) -> (i32, i32) {
    %c0_i32 = arith.constant 0 : i32
    %c0_i32_0 = arith.constant 0 : i32
    return %c0_i32, %arg1 : i32, i32
  }
  func.func @transform_2(%arg0: i32, %arg1: i32) -> (i32, i32) {
    %c0_i32 = arith.constant 0 : i32
    %c0_i32_0 = arith.constant 0 : i32
    return %c0_i32, %arg1 : i32, i32
  }
  func.func @transform_3(%arg0: i32, %arg1: i32) -> (i32, i32) {
    %c0_i32 = arith.constant 0 : i32
    %c0_i32_0 = arith.constant 0 : i32
    return %c0_i32, %arg1 : i32, i32
  }
  func.func @transform_4(%arg0: i32, %arg1: i32) -> (i32, i32) {
    %c0_i32 = arith.constant 0 : i32
    %c0_i32_0 = arith.constant 0 : i32
    return %c0_i32, %arg1 : i32, i32
  }
  func.func @transform_5(%arg0: i32, %arg1: i32) -> (i32, i32, i32) {
    %c0_i32 = arith.constant 0 : i32
    %c0_i32_0 = arith.constant 0 : i32
    return %arg0, %c0_i32, %arg1 : i32, i32, i32
  }
  func.func @transform_6(%arg0: i32, %arg1: i32) -> (i32, i32, i32) {
    %c0_i32 = arith.constant 0 : i32
    %c0_i32_0 = arith.constant 0 : i32
    return %arg0, %c0_i32, %arg1 : i32, i32, i32
  }
}

module attributes {stable_mosaic.version = 11 : i64} {
  func.func @_ln_matmul_kernel(%arg0: i32, %arg1: i32, %arg2: memref<32x32xf32, #tpu.memory_space<vmem>>, %arg3: memref<1x32xf32, #tpu.memory_space<vmem>>, %arg4: memref<1x32xf32, #tpu.memory_space<vmem>>, %arg5: memref<32x128xbf16, #tpu.memory_space<vmem>>, %arg6: memref<1x128xf32, #tpu.memory_space<vmem>>, %arg7: memref<32x1xf32, #tpu.memory_space<vmem>>, %arg8: memref<32x128xf32, #tpu.memory_space<vmem>>) attributes {dimension_semantics = [#tpu.dimension_semantics<parallel>, #tpu.dimension_semantics<parallel>], iteration_bounds = array<i64: 1, 1>, scalar_prefetch = 0 : i64, scratch_operands = 0 : i64, tpu.core_type = #tpu.core_type<tc>, window_params = [{transform_indices = @transform_0, window_bounds = array<i64: 32, 32>}, {pipeline_mode = #tpu.pipeline_mode<synchronous>, transform_indices = @transform_1, window_bounds = array<i64: 1, 32>}, {pipeline_mode = #tpu.pipeline_mode<synchronous>, transform_indices = @transform_2, window_bounds = array<i64: 1, 32>}, {transform_indices = @transform_3, window_bounds = array<i64: 32, 128>}, {transform_indices = @transform_4, window_bounds = array<i64: 1, 128>}, {transform_indices = @transform_5, window_bounds = array<i64: 32, 1>}, {transform_indices = @transform_6, window_bounds = array<i64: 32, 128>}]} {
    %c0 = arith.constant 0 : index
    %c0_0 = arith.constant 0 : index
    %0 = vector.load %arg2[%c0, %c0_0] : memref<32x32xf32, #tpu.memory_space<vmem>>, vector<32x32xf32>
    %cst = arith.constant dense<0.000000e+00> : vector<32xf32>
    %1 = vector.multi_reduction <add>, %0, %cst [1] : vector<32x32xf32> to vector<32xf32>
    %2 = vector.shape_cast %1 : vector<32xf32> to vector<32x1xf32>
    %cst_1 = arith.constant 3.200000e+01 : f32
    %3 = vector.broadcast %cst_1 : f32 to vector<32x1xf32>
    %4 = arith.divf %2, %3 : vector<32x1xf32>
    %5 = vector.broadcast %4 : vector<32x1xf32> to vector<32x32xf32>
    %6 = arith.subf %0, %5 : vector<32x32xf32>
    %7 = arith.mulf %6, %6 : vector<32x32xf32>
    %cst_2 = arith.constant dense<0.000000e+00> : vector<32xf32>
    %8 = vector.multi_reduction <add>, %7, %cst_2 [1] : vector<32x32xf32> to vector<32xf32>
    %9 = vector.shape_cast %8 : vector<32xf32> to vector<32x1xf32>
    %cst_3 = arith.constant 3.200000e+01 : f32
    %10 = vector.broadcast %cst_3 : f32 to vector<32x1xf32>
    %11 = arith.divf %9, %10 : vector<32x1xf32>
    %12 = vector.broadcast %4 : vector<32x1xf32> to vector<32x32xf32>
    %13 = arith.subf %0, %12 : vector<32x32xf32>
    %cst_4 = arith.constant 9.99999996E-13 : f32
    %14 = vector.broadcast %cst_4 : f32 to vector<32x1xf32>
    %15 = arith.addf %11, %14 : vector<32x1xf32>
    %16 = math.rsqrt %15 : vector<32x1xf32>
    %17 = vector.broadcast %16 : vector<32x1xf32> to vector<32x32xf32>
    %18 = arith.mulf %13, %17 : vector<32x32xf32>
    %c0_5 = arith.constant 0 : index
    %c0_6 = arith.constant 0 : index
    %19 = vector.load %arg3[%c0_5, %c0_6] : memref<1x32xf32, #tpu.memory_space<vmem>>, vector<1x32xf32>
    %20 = vector.broadcast %19 : vector<1x32xf32> to vector<32x32xf32>
    %21 = arith.mulf %18, %20 : vector<32x32xf32>
    %c0_7 = arith.constant 0 : index
    %c0_8 = arith.constant 0 : index
    %22 = vector.load %arg4[%c0_7, %c0_8] : memref<1x32xf32, #tpu.memory_space<vmem>>, vector<1x32xf32>
    %23 = vector.broadcast %22 : vector<1x32xf32> to vector<32x32xf32>
    %24 = arith.addf %21, %23 : vector<32x32xf32>
    %25 = arith.truncf %24 : vector<32x32xf32> to vector<32x32xbf16>
    %c0_9 = arith.constant 0 : index
    %c0_10 = arith.constant 0 : index
    %26 = vector.load %arg5[%c0_9, %c0_10] : memref<32x128xbf16, #tpu.memory_space<vmem>>, vector<32x128xbf16>
    %cst_11 = arith.constant dense<0.000000e+00> : vector<32x128xf32>
    %27 = tpu.matmul %25, %26, %cst_11 {dimension_numbers = #tpu.dot_dimension_numbers<[1], [0], [0], [1], [0, 0, 1, 1], [], []>} : vector<32x32xbf16>, vector<32x128xbf16>, vector<32x128xf32> -> vector<32x128xf32>
    %c0_12 = arith.constant 0 : index
    %c0_13 = arith.constant 0 : index
    %28 = vector.load %arg6[%c0_12, %c0_13] : memref<1x128xf32, #tpu.memory_space<vmem>>, vector<1x128xf32>
    %29 = vector.broadcast %28 : vector<1x128xf32> to vector<32x128xf32>
    %30 = arith.addf %27, %29 : vector<32x128xf32>
    %c0_14 = arith.constant 0 : index
    %c0_15 = arith.constant 0 : index
    %31 = vector.load %arg7[%c0_14, %c0_15] : memref<32x1xf32, #tpu.memory_space<vmem>>, vector<32x1xf32>
    %32 = vector.broadcast %31 : vector<32x1xf32> to vector<32x128xf32>
    %33 = arith.mulf %30, %32 : vector<32x128xf32>
    %c0_16 = arith.constant 0 : index
    %c0_17 = arith.constant 0 : index
    %34 = vector.load %arg8[%c0_16, %c0_17] : memref<32x128xf32, #tpu.memory_space<vmem>>, vector<32x128xf32>
    tpu.vector_store %arg8[%c0_16, %c0_17], %33 {strides = array<i32>} : memref<32x128xf32, #tpu.memory_space<vmem>>, vector<32x128xf32>,
    return
  }
  func.func @transform_0(%arg0: i32, %arg1: i32) -> (i32, i32) {
    %c0_i32 = arith.constant 0 : i32
    %c0_i32_0 = arith.constant 0 : i32
    return %arg0, %c0_i32 : i32, i32
  }
  func.func @transform_1(%arg0: i32, %arg1: i32) -> (i32, i32) {
    %c0_i32 = arith.constant 0 : i32
    %c0_i32_0 = arith.constant 0 : i32
    %c0_i32_1 = arith.constant 0 : i32
    return %c0_i32, %c0_i32_0 : i32, i32
  }
  func.func @transform_2(%arg0: i32, %arg1: i32) -> (i32, i32) {
    %c0_i32 = arith.constant 0 : i32
    %c0_i32_0 = arith.constant 0 : i32
    %c0_i32_1 = arith.constant 0 : i32
    return %c0_i32, %c0_i32_0 : i32, i32
  }
  func.func @transform_3(%arg0: i32, %arg1: i32) -> (i32, i32) {
    %c0_i32 = arith.constant 0 : i32
    %c0_i32_0 = arith.constant 0 : i32
    return %c0_i32, %arg1 : i32, i32
  }
  func.func @transform_4(%arg0: i32, %arg1: i32) -> (i32, i32) {
    %c0_i32 = arith.constant 0 : i32
    %c0_i32_0 = arith.constant 0 : i32
    return %c0_i32, %arg1 : i32, i32
  }
  func.func @transform_5(%arg0: i32, %arg1: i32) -> (i32, i32) {
    %c0_i32 = arith.constant 0 : i32
    %c0_i32_0 = arith.constant 0 : i32
    return %arg0, %c0_i32 : i32, i32
  }
  func.func @transform_6(%arg0: i32, %arg1: i32) -> (i32, i32) {
    %c0_i32 = arith.constant 0 : i32
    return %arg0, %arg1 : i32, i32
  }
}

</mosaic_0001>

<bundles_post_ra>
// kernel: prior_decoder_forward.16
= control target key start
LH: loop header
LB: loop body
LE: loop exit
PB: predicated region body
PF: predicated region fallthrough
CT: control target
= control target key end

     0   :  { %s947_s21 = smov 0   ;;  %s949_s22 = smov 0   ;;  %s1030_s0 = inlined_call_operand.vmem [shape: bf16[2,18,34], index: 0, kind: input, shape index: {}]   ;;  %s1031_s1 = inlined_call_operand.vmem [shape: bf16[34,128], index: 1, kind: input, shape index: {}]   ;;  %s1032_s2 = inlined_call_operand.vmem [shape: bf16[34,128], index: 2, kind: input, shape index: {}]   ;;  %s1033_s3 = inlined_call_operand.vmem [shape: bf16[34,128], index: 3, kind: input, shape index: {}]   ;;  %s1034_s4 = inlined_call_operand.vmem [shape: f32[1,128], index: 4, kind: input, shape index: {}]   ;;  %s1035_s5 = inlined_call_operand.vmem [shape: f32[2,16,1], index: 5, kind: input, shape index: {}]   ;;  %s1036_s6 = inlined_call_operand.vmem [shape: f32[2,16,128], index: 6, kind: output, shape index: {}]  }
   0x1   :  { %s951_s23 = smov 0  }
   0x2 LB: > { %s28_s24 = sadd.s32 1, %s903_s22  ;;  %p776_p0 = scmp.ge.s32.totalorder %s907_s23, 1  ;;  %s907_s23 = sphi %s951_s23, %s16_s23   ;;  %s903_s22 = sphi %s949_s22, %s1038_s22   ;;  %s899_s21 = sphi %s947_s21, %s1037_s21  }
   0x3   : > { %p30_p1 = scmp.ge.s32.totalorder %s28_s24, 2  ;;  %p271_p2 = scmp.lt.s32.totalorder %s907_s23, 3 }
   0x5   : > { %s1040_s24 = smov (%p30_p1, %s28_s24), 0  ;;  %p272_p3 = pnand %p776_p0, %p271_p2 }
   0x6   : > { %v873_v0 = vld [vmem:[%s1032_s2] sm:$0xff] (!%p272_p3)   ;;  %v909_v1 = vmov (!%p272_p3), 0.0   ;;  %v875_v3 = vld [vmem:[%s1032_s2 + $0x8] sm:$0xff] (!%p272_p3)   ;;  %p324_p4 = scmp.lt.s32.totalorder (!%p272_p3), %s899_s21, 1  ;;  %vm411_vm0 = vcmask (!%p272_p3), 1040384   ;;  %vm910_vm1 = vmmov (!%p272_p3), 0  }
   0x7   : > { %275 = sbr.rel (%p272_p3) target bundleno = 263 (0x107), region = 44  ;;  %814 = vmatprep.subr.bf16.mxu0 (!%p272_p3), %v909_v1  ;;  %824 = vmatprep.subr.bf16.mxu1 (!%p272_p3), %v909_v1  ;;  %v874_v2 = vld [vmem:[%s1031_s1] sm:$0xff] (!%p272_p3)   ;;  %v876_v4 = vld [vmem:[%s1031_s1 + $0x8] sm:$0xff] (!%p272_p3)   ;;  %v877_v5 = vld [vmem:[%s1032_s2 + $0x10] ss:$0 sps:$4 sm:$0x11] (!%p272_p3)  }
   0x8   : > { %815 = vmatpush3.bf16.msra.mxu0 (!%p272_p3), %v873_v0  ;;  %825 = vmatpush3.bf16.msra.mxu1 (!%p272_p3), %v874_v2  ;;  %v878_v6 = vld [vmem:[%s1031_s1 + $0x10] ss:$0 sps:$4 sm:$0x11] (!%p272_p3)   ;;  %v413_v7 = vsel (!%p272_p3), %vm411_vm0, %v877_v5, 0  ;;  %v911_v11 = vmov (!%p272_p3), 0   ;;  %vm407_vm2 = vcmask (!%p272_p3), 277504  }
   0x9   : > { %816 = vmatprep.subr.bf16.mxu0 (!%p272_p3), %v909_v1  ;;  %826 = vmatprep.subr.bf16.mxu1 (!%p272_p3), %v909_v1  ;;  %v474_v8 = vsel (!%p272_p3), %vm411_vm0, %v878_v6, 0  ;;  %vm379_vm3 = vsmask.f32 (!%p272_p3), 7424  ;;  %v881_v22 = vld [vmem:[%s1033_s3] sm:$0xff] (!%p272_p3)   ;;  %v882_v25 = vld [vmem:[%s1033_s3 + $0x8] sm:$0xff] (!%p272_p3)   ;;  %vm526_vm4 = vcmask (!%p272_p3), 1046528  }
   0xa   : > { %820 = vmatprep.mubr.msk.bf16.mxu0 (!%p272_p3), %vm910_vm1, %v909_v1  ;;  %830 = vmatprep.mubr.msk.bf16.mxu1 (!%p272_p3), %vm910_vm1, %v909_v1  ;;  %v883_v27 = vld [vmem:[%s1033_s3 + $0x10] ss:$0 sps:$4 sm:$0x11] (!%p272_p3)   ;;  %v797_v44 = vld [vmem:[%s1034_s4] ss:$0 sm:$0xff] (!%p272_p3) }
   0xb   : > { %872 = vset.pattern.permute.xlu0 (!%p272_p3), %v911_v11  ;;  %v549_v30 = vsel (!%p272_p3), %vm411_vm0, %v883_v27, 0 }
   0xc   : > { %817 = vmatpush3.bf16.msra.mxu0 (!%p272_p3), %v875_v3  ;;  %827 = vmatpush3.bf16.msra.mxu1 (!%p272_p3), %v876_v4 }
   0xd   : > { %818 = vmatprep.subr.bf16.mxu0 (!%p272_p3), %v909_v1  ;;  %828 = vmatprep.subr.bf16.mxu1 (!%p272_p3), %v909_v1 }
   0xe   : > { %s1042_s21 = smov (!%p324_p4, %s899_s21), 1 }
   0xf   : > { %s844_s13 = smul.u32 12, %s1042_s21  ;;  %s800_s17 = sshll.u32 %s1042_s21, 4 }
  0x10   : > { %819 = vmatpush3.bf16.msra.mxu0 %v413_v7  ;;  %s348_s20 = scalar_lea.vmem %s1035_s5, %s800_s17  ;;  %829 = vmatpush3.bf16.msra.mxu1 %v474_v8  ;;  %s356_s11 = scalar_lea.vmem %s1036_s6, %s800_s17 }
  0x11   : > { %s328_s16 = scalar_lea.vmem %s1030_s0, %s844_s13  ;;  %834 = vmatprep.subr.bf16.mxu0 %v909_v1  ;;  %v603_v14 = vld [vmem:[%s348_s20] sm:$0xff]  ;;  %v604_v18 = vld [vmem:[%s348_s20 + $0x8] sm:$0xff] }
  0x12   : > { %v358_v9 = vld [vmem:[%s328_s16] sm:$0xf]  ;;  %v359_v10 = vld [vmem:[%s328_s16 + $0x4] sm:$0xf]  ;;  %607 = vperm.xlu0 %872, %v603_v14  }
  0x13   : > { %v782_v12 = vcombine.low %v358_v9, %v359_v10  ;;  %v880_v13 = vld [vmem:[%s328_s16 + $0x8] ss:$0 sps:$4 sm:$0x11]   ;;  %v517_v23 = vld [vmem:[%s328_s16] sm:$0xe] }
  0x14   : > { %v388_v17 = vshll.u32 %v880_v13, 16  ;;  %v792_v26 = vcombine.low %v517_v23, %v359_v10  ;;  %v528_v29 = vrot.slane %v880_v13, 1 }
  0x15   : > { %v381_v15 = vshrl.u32 %v782_v12, 16  ;;  %v383_v16 = vshll.u32 %v782_v12, 16  ;;  %831 = vmatmul.mubr.msk.bf16.vlgmr.msra.gmra.mrb[0].mxu1 %vm407_vm2, %v782_v12 }
  0x16   : > { %v390_v20 = vrot.slane %v388_v17, 1  ;;  %612 = vperm.xlu0 %872, %v604_v18   ;;  %v527_v28 = vrot.slane %v792_v26, 1 }
  0x17   : > { %v385_v19 = vrot.slane %v383_v16, 1 }
  0x18   : > { %v529_v31 = vsel %vm526_vm4, %v527_v28, %v528_v29 }
  0x19   : > { %v386_v21 = vor.u32 %v385_v19, %v381_v15 }
  0x1b   : > { %v391_v24 = vsel %vm379_vm3, %v386_v21, %v390_v20 }
  0x1c   : > { %821 = vmatmul.mubr.msk.bf16.vlgmr.msra.gmra.mrb[0].mxu0 %vm407_vm2, %v391_v24 }
  0x1d   : > { %835 = vmatpush3.bf16.msra.mxu0 %v881_v22  ;;  %840 = vmatprep.mubr.msk.bf16.mxu0 %vm910_vm1, %v909_v1 }
  0x1e   : > { %836 = vmatprep.subr.bf16.mxu0 %v909_v1 }
  0x21   : > { %837 = vmatpush3.bf16.msra.mxu0 %v882_v25 }
  0x22   : > { %838 = vmatprep.subr.bf16.mxu0 %v909_v1 }
  0x25   : > { %839 = vmatpush3.bf16.msra.mxu0 %v549_v30 }
  0x28   : > { %841 = vmatmul.mubr.msk.bf16.vlgmr.msra.gmra.mrb[4].mxu0 %vm407_vm2, %v529_v31 }
  0x91   : > { %v608_v42 = vpop.permute.xlu0 %607 }
  0x95   : > { %v613_v53 = vpop.permute.xlu0 %612 }
  0xe8   : > { %v510_v32 = vpop.f32.mrb[0].mxu1 }
  0xe9   : > { %v832_v33 = vpop.f32.mrb[1].mxu1 }
  0xea   : > { %v513_v34 = vpop.f32.mrb[2].mxu1 }
  0xeb   : > { %v833_v35 = vpop.f32.mrb[3].mxu1 }
  0xef   : > { %v449_v36 = vpop.f32.mrb[0].mxu0 }
  0xf0   : > { %v511_v37 = vadd.f32 %v510_v32, %v449_v36  ;;  %v822_v38 = vpop.f32.mrb[1].mxu0 }
  0xf1   : > { %v452_v39 = vpop.f32.mrb[2].mxu0 }
  0xf2   : > { %v514_v40 = vadd.f32 %v513_v34, %v452_v39  ;;  %v823_v41 = vpop.f32.mrb[3].mxu0 }
  0xfb   : > { %v585_v43 = vpop.f32.mrb[4].mxu0 }
  0xfc   : > { %v592_v45 = vadd.f32 %v585_v43, %v511_v37  ;;  %v842_v46 = vpop.f32.mrb[5].mxu0 }
  0xfd   : > { %v588_v47 = vpop.f32.mrb[6].mxu0 }
  0xfe   : > { %v601_v48 = vadd.f32 %v797_v44, %v592_v45  ;;  %v593_v49 = vadd.f32 %v588_v47, %v514_v40  ;;  %v843_v50 = vpop.f32.mrb[7].mxu0 }
 0x100   : > { %v615_v51 = vmul.f32 %v608_v42, %v601_v48  ;;  %v602_v52 = vadd.f32 %v797_v44, %v593_v49 }
 0x102   : > { %v617_v54 = vmul.f32 5.656854, %v615_v51  ;;  %v616_v55 = vmul.f32 %v613_v53, %v602_v52 }
 0x104   : > { %619 = vst [vmem:[%s356_s11] sm:$0xff] %v617_v54  ;;  %v618_v56 = vmul.f32 5.656854, %v616_v55 }
 0x106   : > { %620 = vst [vmem:[%s356_s11 + $0x8] sm:$0xff] %v618_v56 }
 0x107 PF: > { %s16_s23 = sadd.s32 1, %s907_s23   ;;  %s1037_s21 = smov %s903_s22 }
 0x108   : > { %p13_p5 = scmp.ge.s32.totalorder %s16_s23, 4   ;;  %s1038_s22 = smov %s1040_s24 }
 0x10a   :  { %15 = sbr.rel (!%p13_p5) target bundleno = 2 (0x2), region = 89 }

// kernel: prior_decoder_forward.18
= control target key start
LH: loop header
LB: loop body
LE: loop exit
PB: predicated region body
PF: predicated region fallthrough
CT: control target
= control target key end

     0   :  { %vm57_vm0 = vcmask 261120   ;;  %s246_s1 = inlined_call_operand.vmem [shape: bf16[32,128], index: 1, kind: input, shape index: {}]   ;;  %s247_s0 = inlined_call_operand.vmem [shape: bf16[32,32], index: 0, kind: input, shape index: {}]   ;;  %s248_s2 = inlined_call_operand.vmem [shape: f32[1,128], index: 2, kind: input, shape index: {}]   ;;  %s249_s3 = inlined_call_operand.vmem [shape: bf16[32,128], index: 3, kind: output, shape index: {}]  }
   0x1   :  { %v201_v0 = vld [vmem:[%s246_s1] sm:$0xff]   ;;  %v202_v1 = vld [vmem:[%s246_s1 + $0x8] sm:$0xff]  }
   0x2   :  { %193 = vmatprep.subr.bf16.mxu0 %v201_v0  ;;  %v203_v2 = vld [vmem:[%s247_s0] sm:$0xff]   ;;  %v204_v3 = vld [vmem:[%s247_s0 + $0x8] sm:$0xff]  }
   0x3   :  { %194 = vmatpush3.bf16.msra.mxu0 %v201_v0  ;;  %197 = vmatprep.mubr.msk.bf16.mxu0 %vm57_vm0, %v203_v2  ;;  %v169_v5 = vld [vmem:[%s248_s2] ss:$0 sm:$0xff] }
   0x4   :  { %195 = vmatprep.subr.bf16.mxu0 %v202_v1 }
   0x7   :  { %196 = vmatpush3.bf16.msra.mxu0 %v202_v1 }
   0xa   :  { %198 = vmatmul.mubr.msk.bf16.vlgmr.msra.gmra.mrb[0].mxu0 %vm57_vm0, %v204_v3 }
  0xdd   :  { %v199_v4 = vpop.f32.mrb[0].mxu0 }
  0xde   :  { %v98_v6 = vpop.f32.mrb[1].mxu0  ;;  %v137_v8 = vadd.f32 %v199_v4, %v169_v5 }
  0xdf   :  { %v200_v7 = vpop.f32.mrb[2].mxu0  ;;  %v135_v11 = vadd.f32 %v169_v5, %v98_v6 }
  0xe0   :  { %v138_v9 = vadd.f32 %v200_v7, %v169_v5  ;;  %v101_v10 = vpop.f32.mrb[3].mxu0 }
  0xe1   :  { %v136_v12 = vadd.f32 %v169_v5, %v101_v10 }
  0xe2   :  { %v186_v13 = vpack.c.bf16 %v138_v9, %v137_v8 }
  0xe3   :  { %v181_v14 = vpack.c.bf16 %v136_v12, %v135_v11 }
  0xe4   :  { %188 = vst [vmem:[%s249_s3 + $0x8] sm:$0xff] %v186_v13  }
  0xe5   :  { %182 = vst [vmem:[%s249_s3] sm:$0xff] %v181_v14  }

// kernel: prior_decoder_forward.17
= control target key start
LH: loop header
LB: loop body
LE: loop exit
PB: predicated region body
PF: predicated region fallthrough
CT: control target
= control target key end

     0   :  { %vm25_vm0 = vcmask 261120   ;;  %s326_s0 = inlined_call_operand.vmem [shape: f32[32,32], index: 0, kind: input, shape index: {}]   ;;  %s327_s3 = inlined_call_operand.vmem [shape: bf16[32,128], index: 3, kind: input, shape index: {}]   ;;  %s328_s1 = inlined_call_operand.vmem [shape: f32[1,32], index: 1, kind: input, shape index: {}]   ;;  %s329_s2 = inlined_call_operand.vmem [shape: f32[1,32], index: 2, kind: input, shape index: {}]   ;;  %s330_s4 = inlined_call_operand.vmem [shape: f32[1,128], index: 4, kind: input, shape index: {}]   ;;  %s331_s5 = inlined_call_operand.vmem [shape: bf16[32,128], index: 5, kind: output, shape index: {}]  }
   0x1   :  { %v21_v0 = vld [vmem:[%s326_s0] sm:$0xff]  ;;  %v23_v1 = vld [vmem:[%s326_s0 + $0x10] sm:$0xff]  ;;  %v22_v2 = vld [vmem:[%s326_s0 + $0x8] sm:$0xff] }
   0x2   :  { %v26_v3 = vsel %vm25_vm0, %v21_v0, 0.0  ;;  %v32_v4 = vsel %vm25_vm0, %v23_v1, 0.0  ;;  %v24_v5 = vld [vmem:[%s326_s0 + $0x18] sm:$0xff]  ;;  %v29_v6 = vsel %vm25_vm0, %v22_v2, 0.0  ;;  %v243_v28 = vld [vmem:[%s327_s3] sm:$0xff]   ;;  %v244_v29 = vld [vmem:[%s327_s3 + $0x8] sm:$0xff]  }
   0x3   :  { %27 = vadd.xlane.f32.xlu0 %v26_v3  ;;  %33 = vadd.xlane.f32.xlu1 %v32_v4  ;;  %v35_v7 = vsel %vm25_vm0, %v24_v5, 0.0  ;;  %v205_v44 = vld [vmem:[%s328_s1] ss:$0 sm:$0xff] }
   0x4   :  { %235 = vmatprep.subr.bf16.mxu0 %v243_v28  ;;  %v206_v50 = vld [vmem:[%s329_s2] ss:$0 sm:$0xff] }
   0x5   :  { %236 = vmatpush3.bf16.msra.mxu0 %v243_v28  ;;  %v207_v63 = vld [vmem:[%s330_s4] ss:$0 sm:$0xff] }
   0x6   :  { %237 = vmatprep.subr.bf16.mxu0 %v244_v29 }
   0x7   :  { %30 = vadd.xlane.f32.xlu0 %v29_v6  ;;  %36 = vadd.xlane.f32.xlu1 %v35_v7 }
   0x9   :  { %238 = vmatpush3.bf16.msra.mxu0 %v244_v29 }
  0x90   :  { %v28_v8 = vpop.xlane.xlu0 %27  ;;  %v34_v9 = vpop.xlane.xlu1 %33 }
  0x91   :  { %v39_v10 = vmul.f32 0.03125, %v28_v8  ;;  %v41_v11 = vmul.f32 0.03125, %v34_v9 }
  0x93   :  { %v43_v12 = vsub.f32 %v21_v0, %v39_v10  ;;  %v45_v13 = vsub.f32 %v23_v1, %v41_v11 }
  0x94   :  { %v31_v14 = vpop.xlane.xlu0 %30  ;;  %v37_v15 = vpop.xlane.xlu1 %36 }
  0x95   :  { %v40_v16 = vmul.f32 0.03125, %v31_v14  ;;  %v42_v17 = vmul.f32 0.03125, %v37_v15  ;;  %v47_v18 = vmul.f32 %v43_v12, %v43_v12  ;;  %v49_v19 = vmul.f32 %v45_v13, %v45_v13 }
  0x97   :  { %v44_v20 = vsub.f32 %v22_v2, %v40_v16  ;;  %v46_v21 = vsub.f32 %v24_v5, %v42_v17  ;;  %v51_v22 = vsel %vm25_vm0, %v47_v18, 0.0  ;;  %v57_v23 = vsel %vm25_vm0, %v49_v19, 0.0 }
  0x98   :  { %52 = vadd.xlane.f32.xlu0 %v51_v22 }
  0x99   :  { %v48_v24 = vmul.f32 %v44_v20, %v44_v20  ;;  %v50_v25 = vmul.f32 %v46_v21, %v46_v21 }
  0x9b   :  { %v54_v26 = vsel %vm25_vm0, %v48_v24, 0.0  ;;  %v60_v27 = vsel %vm25_vm0, %v50_v25, 0.0 }
  0x9c   :  { %58 = vadd.xlane.f32.xlu0 %v57_v23  ;;  %55 = vadd.xlane.f32.xlu1 %v54_v26 }
  0xa0   :  { %61 = vadd.xlane.f32.xlu1 %v60_v27 }
 0x125   :  { %v53_v30 = vpop.xlane.xlu0 %52 }
 0x126   :  { %v63_v31 = vmul.f32 0.03125, %v53_v30 }
 0x128   :  { %v67_v32 = vadd.f32 1e-12, %v63_v31 }
 0x129   :  { %v56_v33 = vpop.xlane.xlu1 %55  ;;  %v59_v34 = vpop.xlane.xlu0 %58 }
 0x12a   :  { %245 = vrsqrt.f32 %v67_v32  ;;  %v64_v35 = vmul.f32 0.03125, %v56_v33  ;;  %v65_v36 = vmul.f32 0.03125, %v59_v34 }
 0x12c   :  { %v68_v37 = vadd.f32 1e-12, %v64_v35  ;;  %v69_v38 = vadd.f32 1e-12, %v65_v36 }
 0x12d   :  { %v62_v39 = vpop.xlane.xlu1 %61 }
 0x12e   :  { %247 = vrsqrt.f32 %v68_v37  ;;  %v66_v40 = vmul.f32 0.03125, %v62_v39 }
 0x12f   :  { %249 = vrsqrt.f32 %v69_v38 }
 0x130   :  { %v70_v41 = vadd.f32 1e-12, %v66_v40 }
 0x132   :  { %251 = vrsqrt.f32 %v70_v41 }
 0x134   :  { %v246_v42 = vpop.eup %245 }
 0x135   :  { %v75_v43 = vmul.f32 %v246_v42, %v43_v12 }
 0x137   :  { %v86_v48 = vmul.f32 %v205_v44, %v75_v43 }
 0x138   :  { %v248_v45 = vpop.eup %247 }
 0x139   :  { %v250_v46 = vpop.eup %249  ;;  %v76_v47 = vmul.f32 %v248_v45, %v44_v20  ;;  %v97_v54 = vadd.f32 %v206_v50, %v86_v48 }
 0x13a   :  { %v77_v49 = vmul.f32 %v250_v46, %v45_v13 }
 0x13b   :  { %v87_v51 = vmul.f32 %v205_v44, %v76_v47 }
 0x13c   :  { %v252_v52 = vpop.eup %251  ;;  %v88_v56 = vmul.f32 %v205_v44, %v77_v49 }
 0x13d   :  { %v78_v53 = vmul.f32 %v252_v52, %v46_v21  ;;  %v98_v55 = vadd.f32 %v206_v50, %v87_v51 }
 0x13e   :  { %v99_v59 = vadd.f32 %v206_v50, %v88_v56 }
 0x13f   :  { %v101_v57 = vpack.c.bf16 %v98_v55, %v97_v54  ;;  %v89_v58 = vmul.f32 %v205_v44, %v78_v53 }
 0x141   :  { %239 = vmatprep.mubr.msk.bf16.mxu0 %vm25_vm0, %v101_v57  ;;  %v100_v60 = vadd.f32 %v206_v50, %v89_v58 }
 0x143   :  { %v102_v61 = vpack.c.bf16 %v100_v60, %v99_v59 }
 0x145   :  { %240 = vmatmul.mubr.msk.bf16.vlgmr.msra.gmra.mrb[0].mxu0 %vm25_vm0, %v102_v61 }
 0x218   :  { %v241_v62 = vpop.f32.mrb[0].mxu0 }
 0x219   :  { %v166_v0 = vpop.f32.mrb[1].mxu0  ;;  %v175_v2 = vadd.f32 %v241_v62, %v207_v63 }
 0x21a   :  { %v242_v1 = vpop.f32.mrb[2].mxu0  ;;  %v167_v5 = vadd.f32 %v207_v63, %v166_v0 }
 0x21b   :  { %v178_v3 = vadd.f32 %v242_v1, %v207_v63  ;;  %v169_v4 = vpop.f32.mrb[3].mxu0 }
 0x21c   :  { %v170_v6 = vadd.f32 %v207_v63, %v169_v4 }
 0x21d   :  { %v228_v7 = vpack.c.bf16 %v178_v3, %v175_v2 }
 0x21e   :  { %v223_v8 = vpack.c.bf16 %v170_v6, %v167_v5 }
 0x21f   :  { %230 = vst [vmem:[%s331_s5 + $0x8] sm:$0xff] %v228_v7  }
 0x220   :  { %224 = vst [vmem:[%s331_s5] sm:$0xff] %v223_v8  }

// kernel: prior_decoder_forward.19
= control target key start
LH: loop header
LB: loop body
LE: loop exit
PB: predicated region body
PF: predicated region fallthrough
CT: control target
= control target key end

     0   :  { %s459_s12 = smov 0   ;;  %s495_s0 = inlined_call_operand.vmem [shape: bf16[2,16,96], index: 0, kind: input, shape index: {}]   ;;  %s496_s1 = inlined_call_operand.vmem [shape: f32[1,32], index: 1, kind: input, shape index: {}]   ;;  %s497_s2 = inlined_call_operand.vmem [shape: bf16[31,32], index: 2, kind: input, shape index: {}]   ;;  %s498_s3 = inlined_call_operand.vmem [shape: f32[2,2,16,31], index: 3, kind: output, shape index: {}]  }
   0x1 LB: > { %s369_s13 = sadd.s32 4294967295, %s434_s12   ;;  %p373_p0 = scmp.ge.s32.totalorder %s434_s12, 1  ;;  %s434_s12 = sphi %s459_s12, %s13_s12  }
   0x2   : > { %p137_p1 = scmp.lt.s32.totalorder %s434_s12, 3 }
   0x4   : > { %p138_p2 = pnand %p373_p0, %p137_p1 }
   0x5   : > { %v426_v0 = vld [vmem:[%s497_s2] sm:$0xff] (!%p138_p2)   ;;  %p161_p3 = scmp.lt.s32.totalorder (!%p138_p2), %s369_s13, 1  ;;  %s436_s16 = smov (!%p138_p2), 112   ;;  %v427_v1 = vld [vmem:[%s497_s2 + $0x8] sm:$0xff] (!%p138_p2)   ;;  %vm200_vm0 = vcmask (!%p138_p2), 130048   ;;  %v437_v2 = vmov (!%p138_p2), 0.0  }
   0x6   : > { %141 = sbr.rel (%p138_p2) target bundleno = 353 (0x161), region = 32  ;;  %257 = vrot.lane.b32.xlu0 (!%p138_p2), %v426_v0, %s436_s16  ;;  %399 = vmatprep.subr.bf16.mxu0 (!%p138_p2), %v437_v2  ;;  %v205_v3 = vsel (!%p138_p2), %vm200_vm0, %v426_v0, 0  ;;  %vm438_vm1 = vmmov (!%p138_p2), 0   ;;  %v378_v5 = vld [vmem:[%s496_s1] ss:$0 sm:$0xff] (!%p138_p2)  ;;  %v208_v8 = vsel (!%p138_p2), %vm200_vm0, %v427_v1, 0 }
   0x7   : > { %407 = vmatprep.subr.bf16.mxu1 (!%p138_p2), %v437_v2  ;;  %400 = vmatpush3.bf16.xpose.msra.mxu0 (!%p138_p2), %v205_v3  ;;  %vm251_vm2 = vcmask (!%p138_p2), 252928  }
   0x8   : > { %403 = vmatprep.mubr.msk.bf16.mxu0 (!%p138_p2), %vm438_vm1, %v437_v2  ;;  %401 = vmatprep.subr.bf16.mxu0 (!%p138_p2), %v437_v2 }
   0x9   : > { %411 = vmatprep.mubr.msk.bf16.mxu1 (!%p138_p2), %vm438_vm1, %v437_v2 }
   0xa   : > { %259 = vrot.lane.b32.xlu0 (!%p138_p2), %v427_v1, %s436_s16 }
   0xd   : > { %s500_s13 = smov (!%p161_p3, %s369_s13), 1 }
   0xe   : > { %s387_s19 = sshll.u32 %s500_s13, 3  ;;  %s388_s25 = sshll.u32 %s500_s13, 5 }
   0xf   : > { %s165_s22 = scalar_lea.vmem %s495_s0, %s387_s19  ;;  %402 = vmatpush3.bf16.xpose.msra.mxu0 %v208_v8  ;;  %s170_s28 = scalar_lea.vmem %s498_s3, %s388_s25 }
  0x10   : > { %v390_v4 = vld [vmem:[%s165_s22] sm:$0xff]  }
  0x11   : > { %v391_v6 = vunpack.c.l.bf16 %v390_v4  ;;  %v392_v7 = vunpack.c.h.bf16 %v390_v4 }
  0x13   : > { %v187_v9 = vadd.f32 %v391_v6, %v378_v5  ;;  %v188_v10 = vadd.f32 %v392_v7, %v378_v5 }
  0x15   : > { %v189_v11 = vpack.c.bf16 %v188_v10, %v187_v9 }
  0x17   : > { %255 = vrot.lane.b32.xlu1 %v189_v11, %s436_s16  ;;  %404 = vmatmul.mubr.msk.bf16.vlgmr.msra.gmra.mrb[0].mxu0 %vm200_vm0, %v189_v11 }
  0x78   : > { %v258_v12 = vpop.permute.xlu0 %257 }
  0x79   : > { %v265_v13 = vsel %vm200_vm0, %v258_v12, 0 }
  0x7a   : > { %408 = vmatpush3.bf16.xpose.msra.mxu1 %v265_v13 }
  0x7b   : > { %409 = vmatprep.subr.bf16.mxu1 %v437_v2 }
  0x7c   : > { %v260_v14 = vpop.permute.xlu0 %259 }
  0x7d   : > { %v268_v15 = vsel %vm200_vm0, %v260_v14, 0 }
  0x82   : > { %410 = vmatpush3.bf16.xpose.msra.mxu1 %v268_v15 }
  0x89   : > { %v256_v16 = vpop.permute.xlu1 %255 }
  0x8a   : > { %412 = vmatmul.mubr.msk.bf16.vlgmr.msra.gmra.mrb[0].mxu1 %vm200_vm0, %v256_v16 }
  0xea   : > { %v244_v17 = vpop.f32.mrb[0].mxu0 }
  0xeb   : > { %252 = vst.msk [vmem:[%s170_s28] sm:$0xff] %vm251_vm2, %v244_v17  ;;  %v405_v18 = vpop.f32.mrb[1].mxu0 }
  0xec   : > { %v247_v19 = vpop.f32.mrb[2].mxu0 }
  0xed   : > { %253 = vst.msk [vmem:[%s170_s28 + $0x8] sm:$0xff] %vm251_vm2, %v247_v19  ;;  %v406_v20 = vpop.f32.mrb[3].mxu0 }
 0x15d   : > { %v304_v21 = vpop.f32.mrb[0].mxu1 }
 0x15e   : > { %383 = vst.msk [vmem:[%s170_s28 + $0x10] sm:$0xff] %vm251_vm2, %v304_v21  ;;  %v413_v22 = vpop.f32.mrb[1].mxu1 }
 0x15f   : > { %v307_v23 = vpop.f32.mrb[2].mxu1 }
 0x160   : > { %384 = vst.msk [vmem:[%s170_s28 + $0x18] sm:$0xff] %vm251_vm2, %v307_v23  ;;  %v414_v24 = vpop.f32.mrb[3].mxu1 }
 0x161 PF: > { %s13_s12 = sadd.s32 1, %s434_s12  }
 0x162   : > { %p10_p4 = scmp.ge.s32.totalorder %s13_s12, 4  }
 0x164   :  { %12 = sbr.rel (!%p10_p4) target bundleno = 1 (0x1), region = 63 }

// kernel: prior_decoder_forward.21
= control target key start
LH: loop header
LB: loop body
LE: loop exit
PB: predicated region body
PF: predicated region fallthrough
CT: control target
= control target key end

     0   :  { %vm18_vm0 = vcmask 261120   ;;  %vm110_vm1 = vcmask 257024   ;;  %s199_s0 = inlined_call_operand.vmem [shape: f32[32,32], index: 0, kind: input, shape index: {}]   ;;  %s200_s1 = inlined_call_operand.vmem [shape: f32[1,32], index: 1, kind: input, shape index: {}]   ;;  %s201_s2 = inlined_call_operand.vmem [shape: f32[1,32], index: 2, kind: input, shape index: {}]   ;;  %s202_s3 = inlined_call_operand.vmem [shape: bf16[32,32], index: 3, kind: output, shape index: {}]  }
   0x1   :  { %v14_v0 = vld [vmem:[%s199_s0] sm:$0xff]  ;;  %v16_v1 = vld [vmem:[%s199_s0 + $0x10] sm:$0xff]  ;;  %v15_v2 = vld [vmem:[%s199_s0 + $0x8] sm:$0xff] }
   0x2   :  { %v19_v3 = vsel %vm18_vm0, %v14_v0, 0.0  ;;  %v25_v4 = vsel %vm18_vm0, %v16_v1, 0.0  ;;  %v17_v5 = vld [vmem:[%s199_s0 + $0x18] sm:$0xff]  ;;  %v22_v6 = vsel %vm18_vm0, %v15_v2, 0.0  ;;  %v119_v41 = vld [vmem:[%s200_s1] ss:$0 sm:$0xff] }
   0x3   :  { %20 = vadd.xlane.f32.xlu0 %v19_v3  ;;  %26 = vadd.xlane.f32.xlu1 %v25_v4  ;;  %v28_v7 = vsel %vm18_vm0, %v17_v5, 0.0  ;;  %v120_v43 = vld [vmem:[%s201_s2] ss:$0 sm:$0xff] }
   0x7   :  { %23 = vadd.xlane.f32.xlu0 %v22_v6  ;;  %29 = vadd.xlane.f32.xlu1 %v28_v7 }
  0x90   :  { %v21_v8 = vpop.xlane.xlu0 %20  ;;  %v27_v9 = vpop.xlane.xlu1 %26 }
  0x91   :  { %v32_v10 = vmul.f32 0.03125, %v21_v8  ;;  %v34_v11 = vmul.f32 0.03125, %v27_v9 }
  0x93   :  { %v36_v12 = vsub.f32 %v14_v0, %v32_v10  ;;  %v38_v13 = vsub.f32 %v16_v1, %v34_v11 }
  0x94   :  { %v24_v14 = vpop.xlane.xlu0 %23  ;;  %v30_v15 = vpop.xlane.xlu1 %29 }
  0x95   :  { %v33_v16 = vmul.f32 0.03125, %v24_v14  ;;  %v35_v17 = vmul.f32 0.03125, %v30_v15  ;;  %v40_v18 = vmul.f32 %v36_v12, %v36_v12  ;;  %v42_v19 = vmul.f32 %v38_v13, %v38_v13 }
  0x97   :  { %v37_v20 = vsub.f32 %v15_v2, %v33_v16  ;;  %v39_v21 = vsub.f32 %v17_v5, %v35_v17  ;;  %v44_v22 = vsel %vm18_vm0, %v40_v18, 0.0  ;;  %v50_v23 = vsel %vm18_vm0, %v42_v19, 0.0 }
  0x98   :  { %45 = vadd.xlane.f32.xlu0 %v44_v22 }
  0x99   :  { %v41_v24 = vmul.f32 %v37_v20, %v37_v20  ;;  %v43_v25 = vmul.f32 %v39_v21, %v39_v21 }
  0x9b   :  { %v47_v26 = vsel %vm18_vm0, %v41_v24, 0.0  ;;  %v53_v27 = vsel %vm18_vm0, %v43_v25, 0.0 }
  0x9c   :  { %51 = vadd.xlane.f32.xlu0 %v50_v23  ;;  %48 = vadd.xlane.f32.xlu1 %v47_v26 }
  0xa0   :  { %54 = vadd.xlane.f32.xlu1 %v53_v27 }
 0x125   :  { %v46_v28 = vpop.xlane.xlu0 %45 }
 0x126   :  { %v56_v29 = vmul.f32 0.03125, %v46_v28 }
 0x128   :  { %v60_v30 = vadd.f32 1e-12, %v56_v29 }
 0x129   :  { %v49_v31 = vpop.xlane.xlu1 %48  ;;  %v52_v32 = vpop.xlane.xlu0 %51 }
 0x12a   :  { %129 = vrsqrt.f32 %v60_v30  ;;  %v57_v33 = vmul.f32 0.03125, %v49_v31  ;;  %v58_v34 = vmul.f32 0.03125, %v52_v32 }
 0x12c   :  { %v61_v35 = vadd.f32 1e-12, %v57_v33  ;;  %v62_v36 = vadd.f32 1e-12, %v58_v34 }
 0x12d   :  { %v55_v37 = vpop.xlane.xlu1 %54 }
 0x12e   :  { %131 = vrsqrt.f32 %v61_v35  ;;  %v59_v38 = vmul.f32 0.03125, %v55_v37 }
 0x12f   :  { %133 = vrsqrt.f32 %v62_v36 }
 0x130   :  { %v63_v39 = vadd.f32 1e-12, %v59_v38 }
 0x132   :  { %135 = vrsqrt.f32 %v63_v39 }
 0x134   :  { %v130_v40 = vpop.eup %129 }
 0x135   :  { %v68_v42 = vmul.f32 %v130_v40, %v36_v12 }
 0x137   :  { %v79_v44 = vmul.f32 %v119_v41, %v68_v42 }
 0x138   :  { %v132_v45 = vpop.eup %131 }
 0x139   :  { %v134_v46 = vpop.eup %133  ;;  %v90_v47 = vadd.f32 %v120_v43, %v79_v44  ;;  %v69_v48 = vmul.f32 %v132_v45, %v37_v20 }
 0x13a   :  { %v70_v49 = vmul.f32 %v134_v46, %v38_v13 }
 0x13b   :  { %v125_v50 = vpack.c.bf16 %v90_v47, %v90_v47  ;;  %v80_v51 = vmul.f32 %v119_v41, %v69_v48 }
 0x13c   :  { %v136_v52 = vpop.eup %135  ;;  %v81_v53 = vmul.f32 %v119_v41, %v70_v49 }
 0x13d   :  { %111 = vst.msk [vmem:[%s202_s3] sm:$0xf] %vm110_vm1, %v125_v50  ;;  %v91_v54 = vadd.f32 %v120_v43, %v80_v51  ;;  %v71_v55 = vmul.f32 %v136_v52, %v39_v21 }
 0x13e   :  { %v92_v56 = vadd.f32 %v120_v43, %v81_v53 }
 0x13f   :  { %v126_v57 = vpack.c.bf16 %v91_v54, %v91_v54  ;;  %v82_v58 = vmul.f32 %v119_v41, %v71_v55 }
 0x140   :  { %v127_v59 = vpack.c.bf16 %v92_v56, %v92_v56 }
 0x141   :  { %112 = vst.msk [vmem:[%s202_s3 + $0x4] sm:$0xf] %vm110_vm1, %v126_v57  ;;  %v93_v60 = vadd.f32 %v120_v43, %v82_v58 }
 0x142   :  { %113 = vst.msk [vmem:[%s202_s3 + $0x8] sm:$0xf] %vm110_vm1, %v127_v59 }
 0x143   :  { %v128_v61 = vpack.c.bf16 %v93_v60, %v93_v60 }
 0x145   :  { %114 = vst.msk [vmem:[%s202_s3 + $0xc] sm:$0xf] %vm110_vm1, %v128_v61 }

// kernel: prior_decoder_forward.20
= control target key start
LH: loop header
LB: loop body
LE: loop exit
PB: predicated region body
PF: predicated region fallthrough
CT: control target
= control target key end

     0   :  { %s966_s24 = smov 0   ;;  %s1084_s0 = inlined_call_operand.vmem [shape: bf16[2,16,96], index: 0, kind: input, shape index: {}]   ;;  %s1085_s1 = inlined_call_operand.vmem [shape: f32[1,32], index: 1, kind: input, shape index: {}]   ;;  %s1086_s2 = inlined_call_operand.vmem [shape: f32[2,2,16,16], index: 2, kind: input, shape index: {}]   ;;  %s1087_s3 = inlined_call_operand.vmem [shape: f32[2,1,16], index: 3, kind: input, shape index: {}]   ;;  %s1088_s4 = inlined_call_operand.vmem [shape: bf16[32,32], index: 4, kind: input, shape index: {}]   ;;  %s1089_s5 = inlined_call_operand.vmem [shape: f32[1,32], index: 5, kind: input, shape index: {}]   ;;  %s1090_s6 = inlined_call_operand.vmem [shape: f32[2,16,32], index: 6, kind: input, shape index: {}]   ;;  %s1091_s7 = inlined_call_operand.vmem [shape: f32[2,16,32], index: 7, kind: output, shape index: {}]  }
   0x1 LB: > { %s793_s25 = sadd.s32 4294967295, %s915_s24   ;;  %p797_p0 = scmp.ge.s32.totalorder %s915_s24, 1  ;;  %s915_s24 = sphi %s966_s24, %s17_s24  }
   0x2   : > { %p265_p1 = scmp.lt.s32.totalorder %s915_s24, 3 }
   0x4   : > { %p266_p2 = pnand %p797_p0, %p265_p1 }
   0x5   : > { %p310_p3 = scmp.lt.s32.totalorder (!%p266_p2), %s793_s25, 1  ;;  %v917_v0 = vmov (!%p266_p2), 0.0   ;;  %vm918_vm0 = vmmov (!%p266_p2), 0   ;;  %s919_s30 = smov (!%p266_p2), 96   ;;  %vm358_vm1 = vcmask (!%p266_p2), 130048   ;;  %v410_v10 = vlaneseq (!%p266_p2) }
   0x6   : > { %269 = sbr.rel (%p266_p2) target bundleno = 1779 (0x6f3), region = 48  ;;  %835 = vmatprep.subr.bf16.mxu0 (!%p266_p2), %v917_v0  ;;  %837 = vmatprep.mubr.msk.bf16.mxu0 (!%p266_p2), %vm918_vm0, %v917_v0  ;;  %v806_v4 = vld [vmem:[%s1085_s1] ss:$0 sm:$0xff] (!%p266_p2)  ;;  %v920_v14 = vmov (!%p266_p2), 0   ;;  %s921_s17 = smov (!%p266_p2), 64   ;;  %vm654_vm4 = vcmask (!%p266_p2), 261120  }
   0x7   : > { %841 = vmatprep.subr.bf16.mxu1 (!%p266_p2), %v917_v0  ;;  %843 = vmatprep.mubr.msk.bf16.mxu1 (!%p266_p2), %vm918_vm0, %v917_v0  ;;  %v411_v12 = vshrl.u32 (!%p266_p2), %v410_v10, 7  ;;  %s922_s18 = smov (!%p266_p2), 80   ;;  %s923_s19 = smov (!%p266_p2), 112  }
   0x8   : > { %s924_s20 = smov (!%p266_p2), 48   ;;  %s925_s27 = smov (!%p266_p2), 16  }
   0x9   : > { %v412_v13 = vsub.s32 (!%p266_p2), 0, %v411_v12 }
   0xd   : > { %s1093_s25 = smov (!%p310_p3, %s793_s25), 1 }
   0xe   : > { %s820_s26 = sshll.u32 %s1093_s25, 3  ;;  %s322_s12 = scalar_lea.vmem %s1087_s3, %s1093_s25 }
   0xf   : > { %s314_s29 = scalar_lea.vmem %s1084_s0, %s820_s26  ;;  %v337_v11 = vld [vmem:[%s322_s12] sm:$0x1]  ;;  %s821_s13 = sshll.u32 %s1093_s25, 5 }
  0x10   : > { %v986_v1 = vld [vmem:[%s314_s29] sm:$0xff]   ;;  %vm408_vm2 = vcmp.eq.f32.partialorder %v337_v11, 0.0  ;;  %s1007_s16 = scalar_lea.vmem %s1086_s2, %s821_s13  ;;  %s822_s28 = sshll.u32 %s1093_s25, 4 }
  0x11   : > { %356 = vrot.lane.b32.xlu0 %v986_v1, %s919_s30  ;;  %v339_v2 = vunpack.c.h.bf16 %v986_v1  ;;  %v338_v3 = vunpack.c.l.bf16 %v986_v1  ;;  %v409_v15 = vsel %vm408_vm2, 1, %v920_v14  ;;  %v349_v16 = vld [vmem:[%s1007_s16] sm:$0xff]  ;;  %v350_v19 = vld [vmem:[%s1007_s16 + $0x8] sm:$0xff]  ;;  %v810_v58 = vld [vmem:[%s1007_s16 + $0x10] sm:$0xff]  ;;  %s327_s8 = scalar_lea.vmem %s1090_s6, %s822_s28  ;;  %s332_s13 = scalar_lea.vmem %s1091_s7, %s822_s28 }
  0x12   : > { %v1010_v17 = vrot.slane %v409_v15, %v412_v13  ;;  %v811_v60 = vld [vmem:[%s1007_s16 + $0x18] sm:$0xff] }
  0x13   : > { %v346_v7 = vadd.f32 %v806_v4, %v338_v3  ;;  %v347_v8 = vadd.f32 %v806_v4, %v339_v2 }
  0x14   : > { %vm414_vm3 = vcmp.eq.s32.totalorder %v1010_v17, 1 }
  0x15   : > { %v348_v9 = vpack.c.bf16 %v347_v8, %v346_v7 }
  0x83   : > { %v357_v5 = vpop.permute.xlu0 %356 }
  0x84   : > { %v363_v6 = vsel %vm358_vm1, %v357_v5, 0 }
  0x85   : > { %836 = vmatpush3.bf16.xpose.msra.mxu0 %v363_v6 }
  0x86   : > { %853 = vmatprep.subr.bf16.mxu0 %v917_v0 }
  0x8c   : > { %838 = vmatmul.mubr.msk.bf16.vlgmr.msra.gmra.mrb[0].mxu0 %vm358_vm1, %v348_v9 }
  0x8d   : > { %855 = vmatprep.mubr.msk.bf16.mxu0 %vm918_vm0, %v917_v0 }
 0x15f   : > { %v399_v18 = vpop.f32.mrb[0].mxu0 }
 0x160   : > { %v400_v20 = vadd.f32 %v399_v18, %v349_v16  ;;  %v839_v21 = vpop.f32.mrb[1].mxu0 }
 0x161   : > { %v402_v22 = vpop.f32.mrb[2].mxu0 }
 0x162   : > { %v406_v23 = vmul.f32 0.25, %v400_v20  ;;  %v403_v24 = vadd.f32 %v402_v22, %v350_v19  ;;  %v840_v25 = vpop.f32.mrb[3].mxu0 }
 0x164   : > { %v407_v26 = vmul.f32 0.25, %v403_v24  ;;  %v415_v27 = vsel %vm414_vm3, -3.4028235e+38, %v406_v23 }
 0x165   : > { %v417_v28 = vsel %vm358_vm1, %v415_v27, -inf }
 0x166   : > { %418 = vmax.xlane.f32.xlu0 %v417_v28  ;;  %v416_v29 = vsel %vm414_vm3, -3.4028235e+38, %v407_v26 }
 0x167   : > { %v420_v30 = vsel %vm358_vm1, %v416_v29, -inf }
 0x168   : > { %421 = vmax.xlane.f32.xlu1 %v420_v30 }
 0x179   : > { %442 = vrot.lane.b32.xlu1 %v986_v1, %s921_s17 }
 0x1f3   : > { %v419_v31 = vpop.xlane.xlu0 %418 }
 0x1f4   : > { %v423_v32 = vsub.f32 %v415_v27, %v419_v31  ;;  %v891_v31 = vld [vmem:[%s1088_s4 + $0x8] sm:$0xff]  }
 0x1f5   : > { %v422_v33 = vpop.xlane.xlu1 %421 }
 0x1f6   : > { %v425_v34 = vmul.f32 1.442695, %v423_v32  ;;  %v424_v35 = vsub.f32 %v416_v29, %v422_v33 }
 0x1f8   : > { %893 = vpow2.f32 %v425_v34  ;;  %v427_v36 = vmul.f32 1.442695, %v424_v35 }
 0x1f9   : > { %v443_v37 = vpop.permute.xlu1 %442 }
 0x1fa   : > { %895 = vpow2.f32 %v427_v36  ;;  %842 = vmatpush3.bf16.msra.mxu1 %v443_v37 }
 0x1fb   : > { %847 = vmatprep.subr.bf16.mxu1 %v917_v0 }
 0x202   : > { %v894_v38 = vpop.eup %893 }
 0x203   : > { %v429_v39 = vsel %vm358_vm1, %v894_v38, 0.0 }
 0x204   : > { %v896_v40 = vpop.eup %895  ;;  %430 = vadd.xlane.f32.xlu1 %v429_v39 }
 0x205   : > { %v432_v41 = vsel %vm358_vm1, %v896_v40, 0.0 }
 0x208   : > { %433 = vadd.xlane.f32.xlu1 %v432_v41  ;;  %v814_v41 = vld [vmem:[%s1089_s5] ss:$0 sm:$0xff] }
 0x219   : > { %495 = vrot.lane.b32.xlu1 %v986_v1, %s922_s18 }
 0x21d   : > { %493 = vrot.lane.b32.xlu1 %v348_v9, %s923_s19 }
 0x291   : > { %v431_v42 = vpop.xlane.xlu1 %430 }
 0x292   : > { %897 = vrcp.f32 %v431_v42 }
 0x295   : > { %v434_v43 = vpop.xlane.xlu1 %433 }
 0x296   : > { %899 = vrcp.f32 %v434_v43  ;;  %v699_v43 = vld [vmem:[%s327_s8] sm:$0xff] }
 0x299   : > { %v496_v47 = vpop.permute.xlu1 %495 }
 0x29a   : > { %v501_v51 = vsel %vm358_vm1, %v496_v47, 0  ;;  %v700_v47 = vld [vmem:[%s327_s8 + $0x8] sm:$0xff] }
 0x29c   : > { %v898_v44 = vpop.eup %897 }
 0x29d   : > { %v437_v45 = vmul.f32 %v898_v44, %v894_v38  ;;  %v494_v53 = vpop.permute.xlu1 %493 }
 0x29f   : > { %v439_v49 = vsel %vm414_vm3, 0.0, %v437_v45 }
 0x2a0   : > { %v900_v46 = vpop.eup %899 }
 0x2a1   : > { %v438_v48 = vmul.f32 %v900_v46, %v896_v40 }
 0x2a3   : > { %v440_v50 = vsel %vm414_vm3, 0.0, %v438_v48 }
 0x2a4   : > { %v441_v52 = vpack.c.bf16 %v440_v50, %v439_v49 }
 0x2a6   : > { %844 = vmatmul.mubr.msk.bf16.vlgmr.msra.gmra.mrb[0].mxu1 %vm358_vm1, %v441_v52 }
 0x2a7   : > { %848 = vmatpush3.bf16.xpose.msra.mxu1 %v501_v51  ;;  %849 = vmatprep.mubr.msk.bf16.mxu1 %vm918_vm0, %v917_v0 }
 0x2a8   : > { %859 = vmatprep.subr.bf16.mxu1 %v917_v0 }
 0x2ae   : > { %850 = vmatmul.mubr.msk.bf16.vlgmr.msra.gmra.mrb[4].mxu1 %vm358_vm1, %v494_v53 }
 0x2af   : > { %863 = vmatprep.mubr.msk.bf16.mxu1 %vm918_vm0, %v917_v0 }
 0x379   : > { %v1037_v54 = vpop.f32.mrb[0].mxu1 }
 0x37a   : > { %v845_v55 = vpop.f32.mrb[1].mxu1 }
 0x37b   : > { %v1039_v56 = vpop.f32.mrb[2].mxu1 }
 0x37c   : > { %v846_v57 = vpop.f32.mrb[3].mxu1 }
 0x381   : > { %v537_v59 = vpop.f32.mrb[4].mxu1 }
 0x382   : > { %v538_v61 = vadd.f32 %v810_v58, %v537_v59  ;;  %v851_v62 = vpop.f32.mrb[5].mxu1 }
 0x383   : > { %v540_v63 = vpop.f32.mrb[6].mxu1 }
 0x384   : > { %v544_v2 = vmul.f32 0.25, %v538_v61  ;;  %v541_v3 = vadd.f32 %v811_v60, %v540_v63  ;;  %v852_v4 = vpop.f32.mrb[7].mxu1 }
 0x386   : > { %v545_v5 = vmul.f32 0.25, %v541_v3  ;;  %v546_v6 = vsel %vm414_vm3, -3.4028235e+38, %v544_v2 }
 0x387   : > { %v548_v7 = vsel %vm358_vm1, %v546_v6, -inf }
 0x388   : > { %549 = vmax.xlane.f32.xlu0 %v548_v7  ;;  %v547_v8 = vsel %vm414_vm3, -3.4028235e+38, %v545_v5 }
 0x389   : > { %v551_v9 = vsel %vm358_vm1, %v547_v8, -inf }
 0x38a   : > { %552 = vmax.xlane.f32.xlu1 %v551_v9 }
 0x415   : > { %v550_v10 = vpop.xlane.xlu0 %549 }
 0x416   : > { %v554_v11 = vsub.f32 %v546_v6, %v550_v10 }
 0x417   : > { %v553_v12 = vpop.xlane.xlu1 %552 }
 0x418   : > { %v556_v13 = vmul.f32 1.442695, %v554_v11  ;;  %v555_v14 = vsub.f32 %v547_v8, %v553_v12 }
 0x41a   : > { %901 = vpow2.f32 %v556_v13  ;;  %v558_v15 = vmul.f32 1.442695, %v555_v14 }
 0x41c   : > { %903 = vpow2.f32 %v558_v15 }
 0x424   : > { %v902_v16 = vpop.eup %901 }
 0x425   : > { %v560_v18 = vsel %vm358_vm1, %v902_v16, 0.0 }
 0x426   : > { %v904_v19 = vpop.eup %903  ;;  %561 = vadd.xlane.f32.xlu0 %v560_v18 }
 0x427   : > { %v563_v20 = vsel %vm358_vm1, %v904_v19, 0.0 }
 0x42a   : > { %564 = vadd.xlane.f32.xlu0 %v563_v20 }
 0x440   : > { %573 = vrot.lane.b32.xlu0 %v986_v1, %s924_s20  ;;  %v890_v1 = vld [vmem:[%s1088_s4] sm:$0xff]  }
 0x441   : > { %860 = vmatpush3.bf16.msra.mxu1 %v890_v1 }
 0x442   : > { %861 = vmatprep.subr.bf16.mxu1 %v917_v0 }
 0x445   : > { %862 = vmatpush3.bf16.msra.mxu1 %v891_v31 }
 0x4b3   : > { %v562_v21 = vpop.xlane.xlu0 %561 }
 0x4b4   : > { %905 = vrcp.f32 %v562_v21 }
 0x4b7   : > { %v565_v22 = vpop.xlane.xlu0 %564 }
 0x4b8   : > { %907 = vrcp.f32 %v565_v22 }
 0x4bb   : > { %v574_v23 = vpop.permute.xlu0 %573 }
 0x4bc   : > { %854 = vmatpush3.bf16.msra.mxu0 %v574_v23 }
 0x4be   : > { %v906_v24 = vpop.eup %905 }
 0x4bf   : > { %v568_v25 = vmul.f32 %v906_v24, %v902_v16 }
 0x4c1   : > { %v570_v28 = vsel %vm414_vm3, 0.0, %v568_v25 }
 0x4c2   : > { %v908_v26 = vpop.eup %907 }
 0x4c3   : > { %v569_v27 = vmul.f32 %v908_v26, %v904_v19 }
 0x4c5   : > { %v571_v29 = vsel %vm414_vm3, 0.0, %v569_v27 }
 0x4c6   : > { %v572_v30 = vpack.c.bf16 %v571_v29, %v570_v28 }
 0x4c8   : > { %856 = vmatmul.mubr.msk.bf16.vlgmr.msra.gmra.mrb[4].mxu0 %vm358_vm1, %v572_v30 }
 0x59b   : > { %v613_v32 = vpop.f32.mrb[4].mxu0 }
 0x59c   : > { %v857_v33 = vpop.f32.mrb[5].mxu0 }
 0x59d   : > { %v616_v17 = vpop.f32.mrb[6].mxu0 }
 0x59e   : > { %v884_v34 = vpack.i.bf16 %v616_v17, %v613_v32  ;;  %v858_v35 = vpop.f32.mrb[7].mxu0 }
 0x5a0   : > { %885 = vrot.lane.b32.xlu0 %v884_v34, %s925_s27 }
 0x612   : > { %v886_v36 = vpop.permute.xlu0 %885 }
 0x613   : > { %v888_v37 = vunpack.i.h.bf16 %v886_v36  ;;  %v887_v38 = vunpack.i.l.bf16 %v886_v36 }
 0x615   : > { %v629_v39 = vsel %vm358_vm1, %v1039_v56, %v888_v37  ;;  %v628_v0 = vsel %vm358_vm1, %v1037_v54, %v887_v38 }
 0x616   : > { %v630_v40 = vpack.c.bf16 %v629_v39, %v628_v0 }
 0x618   : > { %864 = vmatmul.mubr.msk.bf16.vlgmr.msra.gmra.mrb[8].mxu1 %vm654_vm4, %v630_v40 }
 0x6eb   : > { %v692_v42 = vpop.f32.mrb[8].mxu1 }
 0x6ec   : > { %v693_v44 = vadd.f32 %v814_v41, %v692_v42  ;;  %v865_v45 = vpop.f32.mrb[9].mxu1 }
 0x6ed   : > { %v695_v46 = vpop.f32.mrb[10].mxu1 }
 0x6ee   : > { %v701_v48 = vadd.f32 %v699_v43, %v693_v44  ;;  %v696_v49 = vadd.f32 %v814_v41, %v695_v46  ;;  %v866_v50 = vpop.f32.mrb[11].mxu1 }
 0x6f0   : > { %703 = vst.msk [vmem:[%s332_s13] sm:$0xff] %vm654_vm4, %v701_v48  ;;  %v702_v51 = vadd.f32 %v700_v47, %v696_v49 }
 0x6f2   : > { %704 = vst.msk [vmem:[%s332_s13 + $0x8] sm:$0xff] %vm654_vm4, %v702_v51 }
 0x6f3 PF: > { %s17_s24 = sadd.s32 1, %s915_s24  }
 0x6f4   : > { %p14_p4 = scmp.ge.s32.totalorder %s17_s24, 4  }
 0x6f6   :  { %16 = sbr.rel (!%p14_p4) target bundleno = 1 (0x1), region = 88 }

// kernel: prior_decoder_forward.22
= control target key start
LH: loop header
LB: loop body
LE: loop exit
PB: predicated region body
PF: predicated region fallthrough
CT: control target
= control target key end

     0   :  { %s843_s18 = smov 0   ;;  %s845_s19 = smov 0   ;;  %s907_s0 = inlined_call_operand.vmem [shape: bf16[2,18,32], index: 0, kind: input, shape index: {}]   ;;  %s908_s1 = inlined_call_operand.vmem [shape: bf16[32,128], index: 1, kind: input, shape index: {}]   ;;  %s909_s2 = inlined_call_operand.vmem [shape: bf16[32,128], index: 2, kind: input, shape index: {}]   ;;  %s910_s3 = inlined_call_operand.vmem [shape: bf16[32,128], index: 3, kind: input, shape index: {}]   ;;  %s911_s4 = inlined_call_operand.vmem [shape: f32[1,128], index: 4, kind: input, shape index: {}]   ;;  %s912_s5 = inlined_call_operand.vmem [shape: bf16[2,16,128], index: 5, kind: output, shape index: {}]  }
   0x1   :  { %s847_s20 = smov 0  }
   0x2 LB: > { %s27_s21 = sadd.s32 1, %s805_s19  ;;  %p689_p0 = scmp.ge.s32.totalorder %s809_s20, 1  ;;  %s809_s20 = sphi %s847_s20, %s15_s20   ;;  %s805_s19 = sphi %s845_s19, %s914_s19   ;;  %s801_s18 = sphi %s843_s18, %s913_s18  }
   0x3   : > { %p29_p1 = scmp.ge.s32.totalorder %s27_s21, 2  ;;  %p236_p2 = scmp.lt.s32.totalorder %s809_s20, 3 }
   0x5   : > { %s916_s21 = smov (%p29_p1, %s27_s21), 0  ;;  %p237_p3 = pnand %p689_p0, %p236_p2 }
   0x6   : > { %v778_v0 = vld [vmem:[%s909_s2] sm:$0xff] (!%p237_p3)   ;;  %v811_v1 = vmov (!%p237_p3), 0.0   ;;  %v780_v3 = vld [vmem:[%s909_s2 + $0x8] sm:$0xff] (!%p237_p3)   ;;  %vm812_vm0 = vmmov (!%p237_p3), 0   ;;  %p282_p4 = scmp.lt.s32.totalorder (!%p237_p3), %s801_s18, 1  ;;  %vm355_vm1 = vcmask (!%p237_p3), 261120  }
   0x7   : > { %240 = sbr.rel (%p237_p3) target bundleno = 259 (0x103), region = 40  ;;  %727 = vmatprep.subr.bf16.mxu0 (!%p237_p3), %v811_v1  ;;  %735 = vmatprep.subr.bf16.mxu1 (!%p237_p3), %v811_v1  ;;  %v779_v2 = vld [vmem:[%s908_s1] sm:$0xff] (!%p237_p3)   ;;  %v781_v4 = vld [vmem:[%s908_s1 + $0x8] sm:$0xff] (!%p237_p3)   ;;  %vm330_vm2 = vsmask.f32 (!%p237_p3), 7424  ;;  %vm463_vm3 = vcmask (!%p237_p3), 1046528  }
   0x8   : > { %728 = vmatpush3.bf16.msra.mxu0 (!%p237_p3), %v778_v0  ;;  %731 = vmatprep.mubr.msk.bf16.mxu0 (!%p237_p3), %vm812_vm0, %v811_v1  ;;  %v784_v16 = vld [vmem:[%s910_s3] sm:$0xff] (!%p237_p3)   ;;  %v785_v19 = vld [vmem:[%s910_s3 + $0x8] sm:$0xff] (!%p237_p3)  }
   0x9   : > { %736 = vmatpush3.bf16.msra.mxu1 (!%p237_p3), %v779_v2  ;;  %729 = vmatprep.subr.bf16.mxu0 (!%p237_p3), %v811_v1  ;;  %v705_v34 = vld [vmem:[%s911_s4] ss:$0 sm:$0xff] (!%p237_p3) }
   0xa   : > { %737 = vmatprep.subr.bf16.mxu1 (!%p237_p3), %v811_v1  ;;  %739 = vmatprep.mubr.msk.bf16.mxu1 (!%p237_p3), %vm812_vm0, %v811_v1 }
   0xc   : > { %730 = vmatpush3.bf16.msra.mxu0 (!%p237_p3), %v780_v3 }
   0xd   : > { %738 = vmatpush3.bf16.msra.mxu1 (!%p237_p3), %v781_v4  ;;  %743 = vmatprep.subr.bf16.mxu0 (!%p237_p3), %v811_v1 }
   0xe   : > { %s918_s18 = smov (!%p282_p4, %s801_s18), 1 }
   0xf   : > { %s751_s30 = smul.u32 12, %s918_s18  ;;  %s710_s15 = sshll.u32 %s918_s18, 3 }
  0x10   : > { %s309_s22 = scalar_lea.vmem %s912_s5, %s710_s15 }
  0x11   : > { %s286_s8 = scalar_lea.vmem %s907_s0, %s751_s30 }
  0x12   : > { %v311_v5 = vld [vmem:[%s286_s8] sm:$0xf]  ;;  %v312_v6 = vld [vmem:[%s286_s8 + $0x4] sm:$0xf] }
  0x13   : > { %v693_v7 = vcombine.low %v311_v5, %v312_v6  ;;  %v783_v8 = vld [vmem:[%s286_s8 + $0x8] ss:$0 sps:$4 sm:$0x11]   ;;  %v455_v12 = vld [vmem:[%s286_s8] sm:$0xe] }
  0x14   : > { %v339_v11 = vshll.u32 %v783_v8, 16  ;;  %v701_v17 = vcombine.low %v455_v12, %v312_v6  ;;  %v465_v21 = vrot.slane %v783_v8, 1 }
  0x15   : > { %v332_v9 = vshrl.u32 %v693_v7, 16  ;;  %v334_v10 = vshll.u32 %v693_v7, 16  ;;  %740 = vmatmul.mubr.msk.bf16.vlgmr.msra.gmra.mrb[0].mxu1 %vm355_vm1, %v693_v7 }
  0x16   : > { %v341_v14 = vrot.slane %v339_v11, 1  ;;  %v464_v20 = vrot.slane %v701_v17, 1 }
  0x17   : > { %v336_v13 = vrot.slane %v334_v10, 1 }
  0x18   : > { %v466_v22 = vsel %vm463_vm3, %v464_v20, %v465_v21 }
  0x19   : > { %v337_v15 = vor.u32 %v336_v13, %v332_v9 }
  0x1b   : > { %v342_v18 = vsel %vm330_vm2, %v337_v15, %v341_v14 }
  0x1c   : > { %732 = vmatmul.mubr.msk.bf16.vlgmr.msra.gmra.mrb[0].mxu0 %vm355_vm1, %v342_v18 }
  0x1d   : > { %744 = vmatpush3.bf16.msra.mxu0 %v784_v16  ;;  %747 = vmatprep.mubr.msk.bf16.mxu0 %vm812_vm0, %v811_v1 }
  0x1e   : > { %745 = vmatprep.subr.bf16.mxu0 %v811_v1 }
  0x21   : > { %746 = vmatpush3.bf16.msra.mxu0 %v785_v19 }
  0x24   : > { %748 = vmatmul.mubr.msk.bf16.vlgmr.msra.gmra.mrb[4].mxu0 %vm355_vm1, %v466_v22 }
  0xe8   : > { %v448_v23 = vpop.f32.mrb[0].mxu1 }
  0xe9   : > { %v741_v24 = vpop.f32.mrb[1].mxu1 }
  0xea   : > { %v451_v25 = vpop.f32.mrb[2].mxu1 }
  0xeb   : > { %v742_v26 = vpop.f32.mrb[3].mxu1 }
  0xef   : > { %v393_v27 = vpop.f32.mrb[0].mxu0 }
  0xf0   : > { %v449_v28 = vadd.f32 %v448_v23, %v393_v27  ;;  %v733_v29 = vpop.f32.mrb[1].mxu0 }
  0xf1   : > { %v396_v30 = vpop.f32.mrb[2].mxu0 }
  0xf2   : > { %v452_v31 = vadd.f32 %v451_v25, %v396_v30  ;;  %v734_v32 = vpop.f32.mrb[3].mxu0 }
  0xf7   : > { %v516_v33 = vpop.f32.mrb[4].mxu0 }
  0xf8   : > { %v523_v35 = vadd.f32 %v516_v33, %v449_v28  ;;  %v749_v36 = vpop.f32.mrb[5].mxu0 }
  0xf9   : > { %v519_v37 = vpop.f32.mrb[6].mxu0 }
  0xfa   : > { %v532_v38 = vadd.f32 %v705_v34, %v523_v35  ;;  %v524_v39 = vadd.f32 %v519_v37, %v452_v31  ;;  %v750_v40 = vpop.f32.mrb[7].mxu0 }
  0xfc   : > { %v533_v41 = vadd.f32 %v705_v34, %v524_v39  ;;  %v534_v42 = vmax.f32 %v532_v38, 0.0 }
  0xfe   : > { %v535_v43 = vmax.f32 %v533_v41, 0.0 }
 0x100   : > { %v716_v44 = vpack.c.bf16 %v535_v43, %v534_v42 }
 0x102   : > { %717 = vst [vmem:[%s309_s22] sm:$0xff] %v716_v44  }
 0x103 PF: > { %s15_s20 = sadd.s32 1, %s809_s20   ;;  %s913_s18 = smov %s805_s19 }
 0x104   : > { %p12_p5 = scmp.ge.s32.totalorder %s15_s20, 4   ;;  %s914_s19 = smov %s916_s21 }
 0x106   :  { %14 = sbr.rel (!%p12_p5) target bundleno = 2 (0x2), region = 82 }

// kernel: prior_decoder_forward.23
= control target key start
LH: loop header
LB: loop body
LE: loop exit
PB: predicated region body
PF: predicated region fallthrough
CT: control target
= control target key end

     0   :  { %s990_s21 = smov 0   ;;  %s992_s22 = smov 0   ;;  %s1075_s0 = inlined_call_operand.vmem [shape: bf16[2,18,64], index: 0, kind: input, shape index: {}]   ;;  %s1076_s1 = inlined_call_operand.vmem [shape: bf16[64,128], index: 1, kind: input, shape index: {}]   ;;  %s1077_s2 = inlined_call_operand.vmem [shape: bf16[64,128], index: 2, kind: input, shape index: {}]   ;;  %s1078_s3 = inlined_call_operand.vmem [shape: bf16[64,128], index: 3, kind: input, shape index: {}]   ;;  %s1079_s4 = inlined_call_operand.vmem [shape: f32[1,128], index: 4, kind: input, shape index: {}]   ;;  %s1080_s5 = inlined_call_operand.vmem [shape: f32[2,16,128], index: 5, kind: input, shape index: {}]   ;;  %s1081_s6 = inlined_call_operand.vmem [shape: f32[2,16,128], index: 6, kind: output, shape index: {}]  }
   0x1   :  { %s994_s23 = smov 0  }
   0x2 LB: > { %s28_s24 = sadd.s32 1, %s947_s22  ;;  %p807_p0 = scmp.ge.s32.totalorder %s951_s23, 1  ;;  %s951_s23 = sphi %s994_s23, %s16_s23   ;;  %s947_s22 = sphi %s992_s22, %s1083_s22   ;;  %s943_s21 = sphi %s990_s21, %s1082_s21  }
   0x3   : > { %p30_p1 = scmp.ge.s32.totalorder %s28_s24, 2  ;;  %p276_p2 = scmp.lt.s32.totalorder %s951_s23, 3 }
   0x5   : > { %s1085_s24 = smov (%p30_p1, %s28_s24), 0  ;;  %p277_p3 = pnand %p807_p0, %p276_p2 }
   0x6   : > { %v914_v0 = vld [vmem:[%s1077_s2] sm:$0xff] (!%p277_p3)   ;;  %v953_v1 = vmov (!%p277_p3), 0.0   ;;  %v916_v3 = vld [vmem:[%s1077_s2 + $0x8] sm:$0xff] (!%p277_p3)   ;;  %vm954_vm0 = vmmov (!%p277_p3), 0   ;;  %p332_p4 = scmp.lt.s32.totalorder (!%p277_p3), %s943_s21, 1  ;;  %v918_v5 = vld [vmem:[%s1077_s2 + $0x10] sm:$0xff] (!%p277_p3)  }
   0x7   : > { %280 = sbr.rel (%p277_p3) target bundleno = 265 (0x109), region = 44  ;;  %851 = vmatprep.subr.bf16.mxu0 (!%p277_p3), %v953_v1  ;;  %863 = vmatprep.subr.bf16.mxu1 (!%p277_p3), %v953_v1  ;;  %v915_v2 = vld [vmem:[%s1076_s1] sm:$0xff] (!%p277_p3)   ;;  %v917_v4 = vld [vmem:[%s1076_s1 + $0x8] sm:$0xff] (!%p277_p3)   ;;  %v919_v6 = vld [vmem:[%s1076_s1 + $0x10] sm:$0xff] (!%p277_p3)   ;;  %vm396_vm1 = vsmask.f32 (!%p277_p3), 7424 }
   0x8   : > { %852 = vmatpush3.bf16.msra.mxu0 (!%p277_p3), %v914_v0  ;;  %859 = vmatprep.mubr.msk.bf16.mxu0 (!%p277_p3), %vm954_vm0, %v953_v1  ;;  %v920_v9 = vld [vmem:[%s1077_s2 + $0x18] sm:$0xff] (!%p277_p3)   ;;  %vm433_vm2 = vcmask (!%p277_p3), 523264   ;;  %v924_v19 = vld [vmem:[%s1078_s3] sm:$0xff] (!%p277_p3)   ;;  %v925_v21 = vld [vmem:[%s1078_s3 + $0x8] sm:$0xff] (!%p277_p3)   ;;  %vm557_vm3 = vcmask (!%p277_p3), 1046528  }
   0x9   : > { %864 = vmatpush3.bf16.msra.mxu1 (!%p277_p3), %v915_v2  ;;  %853 = vmatprep.subr.bf16.mxu0 (!%p277_p3), %v953_v1  ;;  %v921_v12 = vld [vmem:[%s1076_s1 + $0x18] sm:$0xff] (!%p277_p3)   ;;  %v926_v23 = vld [vmem:[%s1078_s3 + $0x10] sm:$0xff] (!%p277_p3)   ;;  %v831_v40 = vld [vmem:[%s1079_s4] ss:$0 sm:$0xff] (!%p277_p3) }
   0xa   : > { %865 = vmatprep.subr.bf16.mxu1 (!%p277_p3), %v953_v1  ;;  %871 = vmatprep.mubr.msk.bf16.mxu1 (!%p277_p3), %vm954_vm0, %v953_v1  ;;  %v927_v25 = vld [vmem:[%s1078_s3 + $0x18] sm:$0xff] (!%p277_p3)  }
   0xc   : > { %854 = vmatpush3.bf16.msra.mxu0 (!%p277_p3), %v916_v3 }
   0xd   : > { %866 = vmatpush3.bf16.msra.mxu1 (!%p277_p3), %v917_v4  ;;  %855 = vmatprep.subr.bf16.mxu0 (!%p277_p3), %v953_v1 }
   0xe   : > { %s1087_s21 = smov (!%p332_p4, %s943_s21), 1  ;;  %867 = vmatprep.subr.bf16.mxu1 %v953_v1 }
   0xf   : > { %s887_s11 = smul.u32 12, %s1087_s21  ;;  %s834_s9 = sshll.u32 %s1087_s21, 4 }
  0x10   : > { %856 = vmatpush3.bf16.msra.mxu0 %v918_v5  ;;  %s359_s12 = scalar_lea.vmem %s1080_s5, %s834_s9  ;;  %s367_s21 = scalar_lea.vmem %s1081_s6, %s834_s9 }
  0x11   : > { %s336_s16 = scalar_lea.vmem %s1075_s0, %s887_s11  ;;  %868 = vmatpush3.bf16.msra.mxu1 %v919_v6  ;;  %857 = vmatprep.subr.bf16.mxu0 %v953_v1  ;;  %v640_v43 = vld [vmem:[%s359_s12] sm:$0xff]  ;;  %v641_v48 = vld [vmem:[%s359_s12 + $0x8] sm:$0xff] }
  0x12   : > { %v369_v7 = vld [vmem:[%s336_s16] sm:$0xf]  ;;  %v370_v8 = vld [vmem:[%s336_s16 + $0x4] sm:$0xf]  ;;  %869 = vmatprep.subr.bf16.mxu1 %v953_v1 }
  0x13   : > { %v813_v10 = vcombine.low %v369_v7, %v370_v8  ;;  %v923_v11 = vld [vmem:[%s336_s16 + $0x8] ss:$0 sps:$4 sm:$0x11]   ;;  %v545_v22 = vld [vmem:[%s336_s16] sm:$0xe] }
  0x14   : > { %v405_v15 = vshll.u32 %v923_v11, 16  ;;  %858 = vmatpush3.bf16.msra.mxu0 %v920_v9  ;;  %v825_v24 = vcombine.low %v545_v22, %v370_v8  ;;  %v559_v27 = vrot.slane %v923_v11, 1 }
  0x15   : > { %v398_v13 = vshrl.u32 %v813_v10, 16  ;;  %v400_v14 = vshll.u32 %v813_v10, 16  ;;  %870 = vmatpush3.bf16.msra.mxu1 %v921_v12  ;;  %875 = vmatprep.subr.bf16.mxu0 %v953_v1 }
  0x16   : > { %v407_v17 = vrot.slane %v405_v15, 1  ;;  %v558_v26 = vrot.slane %v825_v24, 1 }
  0x17   : > { %v402_v16 = vrot.slane %v400_v14, 1 }
  0x18   : > { %872 = vmatmul.mubr.msk.bf16.vlgmr.msra.gmra.mrb[0].mxu1 %vm433_vm2, %v813_v10  ;;  %v560_v28 = vsel %vm557_vm3, %v558_v26, %v559_v27 }
  0x19   : > { %v403_v18 = vor.u32 %v402_v16, %v398_v13 }
  0x1b   : > { %v408_v20 = vsel %vm396_vm1, %v403_v18, %v407_v17 }
  0x1c   : > { %860 = vmatmul.mubr.msk.bf16.vlgmr.msra.gmra.mrb[0].mxu0 %vm433_vm2, %v408_v20 }
  0x1d   : > { %876 = vmatpush3.bf16.msra.mxu0 %v924_v19  ;;  %883 = vmatprep.mubr.msk.bf16.mxu0 %vm954_vm0, %v953_v1 }
  0x1e   : > { %877 = vmatprep.subr.bf16.mxu0 %v953_v1 }
  0x21   : > { %878 = vmatpush3.bf16.msra.mxu0 %v925_v21 }
  0x22   : > { %879 = vmatprep.subr.bf16.mxu0 %v953_v1 }
  0x25   : > { %880 = vmatpush3.bf16.msra.mxu0 %v926_v23 }
  0x26   : > { %881 = vmatprep.subr.bf16.mxu0 %v953_v1 }
  0x29   : > { %882 = vmatpush3.bf16.msra.mxu0 %v927_v25 }
  0x2c   : > { %884 = vmatmul.mubr.msk.bf16.vlgmr.msra.gmra.mrb[4].mxu0 %vm433_vm2, %v560_v28 }
  0xeb   : > { %v538_v29 = vpop.f32.mrb[0].mxu1 }
  0xec   : > { %v873_v31 = vpop.f32.mrb[1].mxu1 }
  0xed   : > { %v541_v34 = vpop.f32.mrb[2].mxu1 }
  0xee   : > { %v874_v36 = vpop.f32.mrb[3].mxu1 }
  0xef   : > { %v471_v30 = vpop.f32.mrb[0].mxu0 }
  0xf0   : > { %v539_v32 = vadd.f32 %v538_v29, %v471_v30  ;;  %v861_v33 = vpop.f32.mrb[1].mxu0 }
  0xf1   : > { %v474_v35 = vpop.f32.mrb[2].mxu0 }
  0xf2   : > { %v542_v37 = vadd.f32 %v541_v34, %v474_v35  ;;  %v862_v38 = vpop.f32.mrb[3].mxu0 }
  0xff   : > { %v622_v39 = vpop.f32.mrb[4].mxu0 }
 0x100   : > { %v629_v41 = vadd.f32 %v622_v39, %v539_v32  ;;  %v885_v42 = vpop.f32.mrb[5].mxu0 }
 0x101   : > { %v625_v44 = vpop.f32.mrb[6].mxu0 }
 0x102   : > { %v638_v45 = vadd.f32 %v831_v40, %v629_v41  ;;  %v630_v46 = vadd.f32 %v625_v44, %v542_v37  ;;  %v886_v47 = vpop.f32.mrb[7].mxu0 }
 0x104   : > { %v642_v49 = vadd.f32 %v640_v43, %v638_v45  ;;  %v639_v50 = vadd.f32 %v831_v40, %v630_v46 }
 0x106   : > { %644 = vst [vmem:[%s367_s21] sm:$0xff] %v642_v49  ;;  %v643_v51 = vadd.f32 %v641_v48, %v639_v50 }
 0x108   : > { %645 = vst [vmem:[%s367_s21 + $0x8] sm:$0xff] %v643_v51 }
 0x109 PF: > { %s16_s23 = sadd.s32 1, %s951_s23   ;;  %s1082_s21 = smov %s947_s22 }
 0x10a   : > { %p13_p5 = scmp.ge.s32.totalorder %s16_s23, 4   ;;  %s1083_s22 = smov %s1085_s24 }
 0x10c   :  { %15 = sbr.rel (!%p13_p5) target bundleno = 2 (0x2), region = 89 }

// kernel: prior_decoder_forward.31
= control target key start
LH: loop header
LB: loop body
LE: loop exit
PB: predicated region body
PF: predicated region fallthrough
CT: control target
= control target key end

     0   :  { %vm29_vm0 = vcmask 261120   ;;  %s392_s0 = inlined_call_operand.vmem [shape: f32[32,32], index: 0, kind: input, shape index: {}]   ;;  %s393_s1 = inlined_call_operand.vmem [shape: f32[1,32], index: 1, kind: input, shape index: {}]   ;;  %s394_s2 = inlined_call_operand.vmem [shape: f32[1,32], index: 2, kind: input, shape index: {}]   ;;  %s395_s3 = inlined_call_operand.vmem [shape: bf16[32,128], index: 3, kind: input, shape index: {}]   ;;  %s396_s4 = inlined_call_operand.vmem [shape: f32[1,128], index: 4, kind: input, shape index: {}]   ;;  %s397_s5 = inlined_call_operand.vmem [shape: f32[32,1], index: 5, kind: input, shape index: {}]   ;;  %s398_s6 = inlined_call_operand.hbm [shape: f32[32,128], index: 6, kind: output, shape index: {}]  }
   0x1   :  { %v25_v0 = vld [vmem:[%s392_s0] sm:$0xff]  ;;  %v27_v1 = vld [vmem:[%s392_s0 + $0x10] sm:$0xff]  ;;  %v26_v2 = vld [vmem:[%s392_s0 + $0x8] sm:$0xff] }
   0x2   :  { %v30_v3 = vsel %vm29_vm0, %v25_v0, 0.0  ;;  %v36_v4 = vsel %vm29_vm0, %v27_v1, 0.0  ;;  %v28_v5 = vld [vmem:[%s392_s0 + $0x18] sm:$0xff]  ;;  %v33_v6 = vsel %vm29_vm0, %v26_v2, 0.0 }
   0x3   :  { %31 = vadd.xlane.f32.xlu0 %v30_v3  ;;  %37 = vadd.xlane.f32.xlu1 %v36_v4  ;;  %v39_v7 = vsel %vm29_vm0, %v28_v5, 0.0 }
   0x4   :  { %11 = vsyncpa [#allocation3], 0  ;;  %v258_v28 = vld [vmem:[%s395_s3] sm:$0xff]   ;;  %v259_v29 = vld [vmem:[%s395_s3 + $0x8] sm:$0xff]   ;;  %v292_v31 = vmov 0  }
   0x5   :  { %244 = vmatprep.subr.bf16.mxu0 %v258_v28  ;;  %v186_v30 = vld [vmem:[%s397_s5 + $0x8] sm:$0xff]  ;;  %257 = vset.pattern.permute.xlu1 %v292_v31  ;;  %v185_v32 = vld [vmem:[%s397_s5] sm:$0xff]  ;;  %v187_v33 = vld [vmem:[%s397_s5 + $0x10] sm:$0xff] }
   0x6   :  { %245 = vmatpush3.bf16.msra.mxu0 %v258_v28  ;;  %256 = vset.pattern.permute.xlu0 %v292_v31  ;;  %v188_v34 = vld [vmem:[%s397_s5 + $0x18] sm:$0xff]  ;;  %v233_v49 = vld [vmem:[%s393_s1] ss:$0 sm:$0xff] }
   0x7   :  { %34 = vadd.xlane.f32.xlu0 %v33_v6  ;;  %40 = vadd.xlane.f32.xlu1 %v39_v7  ;;  %v234_v55 = vld [vmem:[%s394_s2] ss:$0 sm:$0xff]  ;;  %s293_s2 = smov [#allocation2]  }
   0x8   :  { %246 = vmatprep.subr.bf16.mxu0 %v259_v29  ;;  %s222_s19 = sshll.u32 %s293_s2, 4  ;;  %s223_s19 = int_to_ptr.vmem [resolvable:$true] %s222_s19 }
   0x9   :  { %p273_p1 = scmp.lt.s32.totalorder %s223_s19, %s223_s19 }
   0xa   :  { %247 = vmatpush3.bf16.msra.mxu0 %v259_v29 }
  0x90   :  { %v32_v8 = vpop.xlane.xlu0 %31  ;;  %v38_v9 = vpop.xlane.xlu1 %37 }
  0x91   :  { %v43_v10 = vmul.f32 0.03125, %v32_v8  ;;  %v45_v11 = vmul.f32 0.03125, %v38_v9 }
  0x93   :  { %v47_v12 = vsub.f32 %v25_v0, %v43_v10  ;;  %v49_v13 = vsub.f32 %v27_v1, %v45_v11 }
  0x94   :  { %v35_v14 = vpop.xlane.xlu0 %34  ;;  %v41_v15 = vpop.xlane.xlu1 %40 }
  0x95   :  { %v44_v16 = vmul.f32 0.03125, %v35_v14  ;;  %v46_v17 = vmul.f32 0.03125, %v41_v15  ;;  %v51_v18 = vmul.f32 %v47_v12, %v47_v12  ;;  %v53_v19 = vmul.f32 %v49_v13, %v49_v13 }
  0x97   :  { %v48_v20 = vsub.f32 %v26_v2, %v44_v16  ;;  %v50_v21 = vsub.f32 %v28_v5, %v46_v17  ;;  %v55_v22 = vsel %vm29_vm0, %v51_v18, 0.0  ;;  %v61_v23 = vsel %vm29_vm0, %v53_v19, 0.0  ;;  %v235_v5 = vld [vmem:[%s396_s4] ss:$0 sm:$0xff]  ;;  %s268_s4 = scalar_lea.vmem %s223_s19, 512 }
  0x98   :  { %56 = vadd.xlane.f32.xlu0 %v55_v22  ;;  %p269_p0 = scmp.ne.s32.totalorder %s223_s19, %s268_s4  ;;  %p274_p2 = scmp.lt.s32.totalorder %s268_s4, %s268_s4 }
  0x99   :  { %v52_v24 = vmul.f32 %v48_v20, %v48_v20  ;;  %v54_v25 = vmul.f32 %v50_v21, %v50_v21 }
  0x9a   :  { %p275_p3 = por %p274_p2, %p273_p1 }
  0x9b   :  { %v58_v26 = vsel %vm29_vm0, %v52_v24, 0.0  ;;  %v64_v27 = vsel %vm29_vm0, %v54_v25, 0.0 }
  0x9c   :  { %62 = vadd.xlane.f32.xlu0 %v61_v23  ;;  %59 = vadd.xlane.f32.xlu1 %v58_v26  ;;  %p276_p4 = pnand %p275_p3, %p269_p0 }
  0xa0   :  { %65 = vadd.xlane.f32.xlu1 %v64_v27 }
  0xb1   :  { %196 = vperm.xlu1 %257, %v186_v30  }
  0xb2   :  { %191 = vperm.xlu0 %256, %v185_v32  }
  0xb5   :  { %201 = vperm.xlu1 %257, %v187_v33  }
  0xb9   :  { %206 = vperm.xlu1 %257, %v188_v34  }
 0x125   :  { %v57_v35 = vpop.xlane.xlu0 %56 }
 0x126   :  { %v67_v36 = vmul.f32 0.03125, %v57_v35 }
 0x128   :  { %v71_v37 = vadd.f32 1e-12, %v67_v36 }
 0x129   :  { %v60_v38 = vpop.xlane.xlu1 %59  ;;  %v63_v39 = vpop.xlane.xlu0 %62 }
 0x12a   :  { %260 = vrsqrt.f32 %v71_v37  ;;  %v68_v40 = vmul.f32 0.03125, %v60_v38  ;;  %v69_v41 = vmul.f32 0.03125, %v63_v39 }
 0x12c   :  { %v72_v42 = vadd.f32 1e-12, %v68_v40  ;;  %v73_v43 = vadd.f32 1e-12, %v69_v41 }
 0x12d   :  { %v66_v44 = vpop.xlane.xlu1 %65 }
 0x12e   :  { %262 = vrsqrt.f32 %v72_v42  ;;  %v70_v45 = vmul.f32 0.03125, %v66_v44 }
 0x12f   :  { %264 = vrsqrt.f32 %v73_v43 }
 0x130   :  { %v74_v46 = vadd.f32 1e-12, %v70_v45 }
 0x131   :  { %v197_v3 = vpop.permute.xlu1 %196  ;;  %v192_v9 = vpop.permute.xlu0 %191 }
 0x132   :  { %266 = vrsqrt.f32 %v74_v46 }
 0x134   :  { %v261_v47 = vpop.eup %260 }
 0x135   :  { %v79_v48 = vmul.f32 %v261_v47, %v47_v12  ;;  %v202_v4 = vpop.permute.xlu1 %201 }
 0x137   :  { %v90_v53 = vmul.f32 %v233_v49, %v79_v48 }
 0x138   :  { %v263_v50 = vpop.eup %262 }
 0x139   :  { %v265_v51 = vpop.eup %264  ;;  %v80_v52 = vmul.f32 %v263_v50, %v48_v20  ;;  %v101_v59 = vadd.f32 %v234_v55, %v90_v53  ;;  %v207_v15 = vpop.permute.xlu1 %206 }
 0x13a   :  { %v81_v54 = vmul.f32 %v265_v51, %v49_v13 }
 0x13b   :  { %v91_v56 = vmul.f32 %v233_v49, %v80_v52 }
 0x13c   :  { %v267_v57 = vpop.eup %266  ;;  %v92_v61 = vmul.f32 %v233_v49, %v81_v54 }
 0x13d   :  { %v82_v58 = vmul.f32 %v267_v57, %v50_v21  ;;  %v102_v60 = vadd.f32 %v234_v55, %v91_v56 }
 0x13e   :  { %v103_v0 = vadd.f32 %v234_v55, %v92_v61 }
 0x13f   :  { %v105_v62 = vpack.c.bf16 %v102_v60, %v101_v59  ;;  %v93_v63 = vmul.f32 %v233_v49, %v82_v58 }
 0x141   :  { %248 = vmatprep.mubr.msk.bf16.mxu0 %vm29_vm0, %v105_v62  ;;  %v104_v1 = vadd.f32 %v234_v55, %v93_v63 }
 0x143   :  { %v106_v2 = vpack.c.bf16 %v104_v1, %v103_v0 }
 0x145   :  { %249 = vmatmul.mubr.msk.bf16.vlgmr.msra.gmra.mrb[0].mxu0 %vm29_vm0, %v106_v2 }
 0x218   :  { %v250_v6 = vpop.f32.mrb[0].mxu0 }
 0x219   :  { %v179_v7 = vadd.f32 %v250_v6, %v235_v5  ;;  %v170_v8 = vpop.f32.mrb[1].mxu0 }
 0x21a   :  { %v171_v10 = vadd.f32 %v235_v5, %v170_v8  ;;  %v251_v11 = vpop.f32.mrb[2].mxu0 }
 0x21b   :  { %v211_v12 = vmul.f32 %v202_v4, %v179_v7  ;;  %v182_v13 = vadd.f32 %v251_v11, %v235_v5  ;;  %v173_v14 = vpop.f32.mrb[3].mxu0 }
 0x21c   :  { %v174_v16 = vadd.f32 %v235_v5, %v173_v14  ;;  %v209_v17 = vmul.f32 %v192_v9, %v171_v10 }
 0x21d   :  { %215 = vst [vmem:[#allocation2 + $0x10] sm:$0xff] %v211_v12  ;;  %v212_v18 = vmul.f32 %v207_v15, %v182_v13 }
 0x21e   :  { %v210_v19 = vmul.f32 %v197_v3, %v174_v16  ;;  %213 = vst [vmem:[#allocation2] sm:$0xff] %v209_v17 }
 0x21f   :  { %216 = vst [vmem:[#allocation2 + $0x18] sm:$0xff] %v212_v18 }
 0x220   :  { %214 = vst [vmem:[#allocation2 + $0x8] sm:$0xff] %v210_v19 }
 0x221   :  { %279 = shalt.err (!%p276_p4)
}
 0x222   :  { %s280_s22 = scalar_lea.hbm %s398_s6, 512 }
 0x223   :  { %p281_p5 = scmp.ne.s32.totalorder %s398_s6, %s280_s22  ;;  %p284_p6 = scmp.lt.u32.totalorder %s280_s22, %s398_s6 }
 0x225   :  { %p286_p7 = pnand %p284_p6, %p281_p5 }
 0x227   :  { %289 = shalt.err (!%p286_p7)
}
 0x228   :  { %s294_s27 = smov 128   ;;  %s295_s28 = smov 8  }
 0x229   :  { %228 = dma.vmem_to_hbm [thread:$0]  %s223_s19, 512, %s398_s6, [#allocation3], %s294_s27, %s294_s27, %s295_s28  }
 0x22a   :  { %290 = dma.done.wait [#allocation3], 512  }
 0x22b   :  { %291 = vsyncadd [#allocation3], 4294966784 }
 0x22c   :  { %232 = vsyncpa [#allocation3], 1 }

</bundles_post_ra>
